<compile_context>
chip_gen: v5e
topology: v5e:2x2
jax: 0.10.0
libtpu: 0.0.40
codegen_flags: <defaults>
</compile_context>

<pallas_src>
import numpy as np
import jax
import jax.numpy as jnp
from jax import lax
from jax.experimental import pallas as pl
from jax.experimental.pallas import tpu as pltpu

N_OUT = 8          # numOutputs for the synthetic module instance
EPS = 1e-5         # nn.GroupNorm default eps


# ----------------------------------------------------------------------------
# Pallas kernel: full forward pass for one block of BB batch elements
# ----------------------------------------------------------------------------
def _qcnn_kernel(x_ref,      # (20, BB, 144) bf16 : rows=(h_out, b), lane = kh*48 + w_in*4 + c_in
                 w1_ref,     # (144, 256) bf16    conv1 fused weight (even|odd w_out halves)
                 G1_ref,     # (128, 128) f32     GN1 group indicator
                 w2_ref,     # (256, 128) bf16    conv2 fused weight (w3=0 | w3=1 column halves)
                 G2_ref,     # (64, 64)   f32     GN2 group indicator
                 w3_ref,     # (256, 128) bf16    fc1 weight (rows = h4*64 + c)
                 w4_ref,     # (128, 128) f32     fc2 weight (cols >= n_out are zero)
                 vec_ref,    # (8, 128)   f32     packed per-lane constants (biases / gamma / beta)
                 out_ref):   # (BB, 128)  f32
    f32 = jnp.float32
    bf16 = jnp.bfloat16
    BB = x_ref.shape[1]

    vec = vec_ref[...]
    b1, g1, be1 = vec[0:1, :], vec[1:2, :], vec[2:3, :]        # lane = c*4 + w2
    b3, b4 = vec[3:4, :], vec[4:5, :]
    b2, g2, be2 = vec[5:6, 0:64], vec[6:7, 0:64], vec[7:8, 0:64]   # lane = c

    # ---- Conv2d(4->32, k=(3,5), stride=1, pad=1, groups=4): ONE bf16 matmul ----
    # acc lanes: [0:128) even w_out (c_out*4 + w_half), [128:256) odd w_out.
    x = x_ref[...].reshape(20 * BB, 144)
    acc = jnp.dot(x, w1_ref[...], preferred_element_type=f32)          # (20*BB, 256)

    # ---- MaxPool2d(2,2): (20,8) -> (10,4); conv1 bias moved after the pool ----
    wmax = jnp.maximum(acc[:, 0:128], acc[:, 128:256])                 # pool W (even vs odd)
    x1 = jnp.max(wmax.reshape(10, 2, BB, 128), axis=1) + b1            # (10, BB, 128)

    # ---- GroupNorm(num_groups=4, num_channels=32) + ReLU (affine folded) ----
    s1 = jnp.sum(x1, axis=0)                                           # (BB, 128)
    q1 = jnp.sum(x1 * x1, axis=0)
    gs1 = jnp.dot(s1, G1_ref[...], preferred_element_type=f32)
    gq1 = jnp.dot(q1, G1_ref[...], preferred_element_type=f32)
    n1 = 8.0 * 10.0 * 4.0
    mean1 = gs1 / n1
    var1 = jnp.maximum(gq1 / n1 - mean1 * mean1, 0.0)
    a1 = lax.rsqrt(var1 + EPS) * g1                                    # (BB, 128)
    c1 = be1 - mean1 * a1
    x1 = jnp.maximum(x1 * a1 + c1, 0.0).astype(bf16)                   # (10, BB, 128)

    # ---- Conv2d(32->64, k=(2,2), groups=4): ONE bf16 matmul over K=256 ----
    # (only the rows/cols that survive MaxPool2's floor semantics are computed)
    lhs2 = jnp.concatenate(
        [x1[0:8].reshape(8 * BB, 128), x1[1:9].reshape(8 * BB, 128)], axis=1)
    out2 = jnp.dot(lhs2, w2_ref[...], preferred_element_type=f32)      # (8*BB, 128)

    # ---- MaxPool2d(2,2): (9,3) -> (4,1); conv2 bias moved after the pool ----
    wmax2 = jnp.maximum(out2[:, 0:64], out2[:, 64:128])                # pool W (w3=0 vs 1)
    y2 = jnp.max(wmax2.reshape(4, 2, BB, 64), axis=1) + b2             # (4, BB, 64)

    # ---- GroupNorm(num_groups=32, num_channels=64) + ReLU (affine folded) ----
    s2 = jnp.sum(y2, axis=0)                                           # (BB, 64)
    q2 = jnp.sum(y2 * y2, axis=0)
    gs2 = jnp.dot(s2, G2_ref[...], preferred_element_type=f32)
    gq2 = jnp.dot(q2, G2_ref[...], preferred_element_type=f32)
    n2 = 2.0 * 4.0
    mean2 = gs2 / n2
    var2 = jnp.maximum(gq2 / n2 - mean2 * mean2, 0.0)
    a2 = lax.rsqrt(var2 + EPS) * g2
    c2 = be2 - mean2 * a2
    y2 = jnp.maximum(y2 * a2 + c2, 0.0).astype(bf16)                   # (4, BB, 64)

    # ---- Flatten (NCHW order folded into w3) + Linear(256,128) + ReLU: ONE matmul ----
    zin = jnp.concatenate([y2[0], y2[1], y2[2], y2[3]], axis=1)        # (BB, 256), lane = h4*64 + c
    z = jnp.maximum(jnp.dot(zin, w3_ref[...], preferred_element_type=f32) + b3, 0.0)

    # ---- Linear(128, n_out) kept in f32, padded to 128 lanes (lane-dense store) ----
    out_ref[...] = jnp.dot(z, w4_ref[...], preferred_element_type=f32) + b4


# ----------------------------------------------------------------------------
# Wrapper: layout plumbing + pallas_call
# ----------------------------------------------------------------------------
def _round_up(n, m):
    return ((n + m - 1) // m) * m


def qcnn_forward(x_nchw, kparams, n_out=N_OUT, block_b=128):
    B = x_nchw.shape[0]

    # Batch block: multiple of 16 (bf16 sublane packing) once above 8, and split
    # so there are >= 2 grid steps when possible (engages both TCs on v7x).
    # v6e (single big TC, 128 MiB VMEM) can pass block_b=256 here.
    BB = min(block_b, _round_up(B, 8))
    if BB > 8:
        BB = _round_up(BB, 16)
    if BB > 16 and _round_up(B, BB) // BB < 2:
        BB = max(16, _round_up(BB // 2, 16))
    B_pad = _round_up(B, BB)

    # Layout plumbing only: NCHW -> (H, B, W, C), zero-pad (conv1 padding=1 and
    # batch), fold (W, C) into a 48-lane axis, then im2col the 3 kh taps into a
    # 144-lane axis so conv1 is one K=144 matmul.  bf16 halves the input DMA.
    x = jnp.transpose(x_nchw.astype(jnp.float32), (2, 0, 3, 1))    # (20, B, 10, 4)
    x = jnp.pad(x, ((1, 1), (0, B_pad - B), (1, 1), (0, 0)))       # (22, B_pad, 12, 4)
    x = x.reshape(22, B_pad, 48)
    x = jnp.concatenate([x[0:20], x[1:21], x[2:22]], axis=-1)      # (20, B_pad, 144)
    x = x.astype(jnp.bfloat16)

    def const_spec(a):
        nd = a.ndim
        return pl.BlockSpec(a.shape, lambda i, _nd=nd: (0,) * _nd)

    in_specs = [pl.BlockSpec((20, BB, 144), lambda i: (0, i, 0))]
    in_specs += [const_spec(p) for p in kparams]

    out = pl.pallas_call(
        _qcnn_kernel,
        grid=(B_pad // BB,),
        in_specs=in_specs,
        out_specs=pl.BlockSpec((BB, 128), lambda i: (i, 0)),
        out_shape=jax.ShapeDtypeStruct((B_pad, 128), jnp.float32),
        compiler_params=pltpu.CompilerParams(
            dimension_semantics=("parallel",),
            vmem_limit_bytes=32 * 1024 * 1024),
    )(x, *kparams)
    return out[:B, :n_out]


# ----------------------------------------------------------------------------
# Deterministic parameter init (PyTorch module shapes) + kernel-layout repack
# ----------------------------------------------------------------------------
def init_torch_params(key, n_out=N_OUT):
    ks = jax.random.split(key, 8)
    p = {}
    p['w1'] = jax.random.normal(ks[0], (32, 1, 3, 5), jnp.float32) * 0.1     # Conv2d(4,32,(3,5),groups=4)
    p['b1'] = jax.random.normal(ks[1], (32,), jnp.float32) * 0.1
    p['gamma1'] = jnp.ones((32,), jnp.float32)                               # GroupNorm defaults
    p['beta1'] = jnp.zeros((32,), jnp.float32)
    p['w2'] = jax.random.normal(ks[2], (64, 8, 2, 2), jnp.float32) * 0.1     # Conv2d(32,64,(2,2),groups=4)
    p['b2'] = jax.random.normal(ks[3], (64,), jnp.float32) * 0.1
    p['gamma2'] = jnp.ones((64,), jnp.float32)
    p['beta2'] = jnp.zeros((64,), jnp.float32)
    p['fw1'] = jax.random.normal(ks[4], (128, 256), jnp.float32) * 0.05      # Linear(256,128)
    p['fb1'] = jax.random.normal(ks[5], (128,), jnp.float32) * 0.05
    p['fw2'] = jax.random.normal(ks[6], (n_out, 128), jnp.float32) * 0.05    # Linear(128,n_out)
    p['fb2'] = jax.random.normal(ks[7], (n_out,), jnp.float32) * 0.05
    return p


def to_kernel_params(p):
    n_out = int(np.asarray(p['fw2']).shape[0])

    # conv1 fused RHS (144,256): row = kh*48 + w_in*4 + c_in; col = side*128 + c_out*4 + w_half
    # with w_out = 2*w_half + side and w_in = w_out + kw (padded-W index, 0..11).
    w1 = np.asarray(p['w1'])                                              # (32,1,3,5)
    W1 = np.zeros((144, 256), np.float32)
    for kh in range(3):
        for co in range(32):
            ci = co // 8                                                  # grouped: 1 in-ch per group
            for wh in range(4):
                for side in range(2):
                    w_out = 2 * wh + side
                    for kw in range(5):
                        w_in = w_out + kw
                        W1[kh * 48 + w_in * 4 + ci, side * 128 + co * 4 + wh] = w1[co, 0, kh, kw]

    # conv2 fused RHS (256,128): row = kh*128 + c_in*4 + w2_in, col = w3*64 + c_out,
    # with w2_in = w3 + kw; the groups=4 block structure is folded in.
    w2 = np.asarray(p['w2'])                                              # (64,8,2,2)
    W2 = np.zeros((256, 128), np.float32)
    for kh in range(2):
        for co in range(64):
            go = co // 16
            for j in range(8):
                cin = go * 8 + j
                for kw in range(2):
                    for w3 in range(2):
                        W2[kh * 128 + cin * 4 + (w3 + kw), w3 * 64 + co] = w2[co, j, kh, kw]

    # fc1 fused RHS (256,128): row = h4*64 + c; PyTorch flatten of (64,4,1) is feature = c*4 + h4.
    fw1 = np.asarray(p['fw1'])                                            # (128,256)
    W3 = np.zeros((256, 128), np.float32)
    for h4 in range(4):
        for c in range(64):
            W3[h4 * 64 + c, :] = fw1[:, c * 4 + h4]

    # fc2 (f32), padded to (128,128) for a lane-dense output store.
    fw2 = np.asarray(p['fw2'])                                            # (n_out,128)
    W4 = np.zeros((128, 128), np.float32)
    W4[:, :n_out] = fw2.T

    # GroupNorm group-indicator matrices (f32 for tight statistics).
    G1 = (np.arange(128)[:, None] // 32 == np.arange(128)[None, :] // 32).astype(np.float32)
    G2 = (np.arange(64)[:, None] // 2 == np.arange(64)[None, :] // 2).astype(np.float32)

    # All (1,N) bias / gamma / beta vectors packed into one (8,128) constant slab.
    VEC = np.zeros((8, 128), np.float32)
    VEC[0, :] = np.repeat(np.asarray(p['b1']), 4)        # conv1 bias (post-pool), lane = c*4 + w2
    VEC[1, :] = np.repeat(np.asarray(p['gamma1']), 4)
    VEC[2, :] = np.repeat(np.asarray(p['beta1']), 4)
    VEC[3, :] = np.asarray(p['fb1'])
    VEC[4, :n_out] = np.asarray(p['fb2'])
    VEC[5, :64] = np.asarray(p['b2'])                    # conv2 bias (post-pool), lane = c
    VEC[6, :64] = np.asarray(p['gamma2'])
    VEC[7, :64] = np.asarray(p['beta2'])

    return (jnp.asarray(W1, jnp.bfloat16), jnp.asarray(G1),
            jnp.asarray(W2, jnp.bfloat16), jnp.asarray(G2),
            jnp.asarray(W3, jnp.bfloat16),
            jnp.asarray(W4), jnp.asarray(VEC))


# ----------------------------------------------------------------------------
# Pure-JAX reference (mirrors the PyTorch nn.Sequential exactly, f32)
# ----------------------------------------------------------------------------
def _group_norm_ref(y, num_groups, gamma, beta, eps=EPS):
    B, C, H, W = y.shape
    yr = y.reshape(B, num_groups, -1)
    mean = yr.mean(axis=-1, keepdims=True)
    var = ((yr - mean) ** 2).mean(axis=-1, keepdims=True)
    yr = (yr - mean) / jnp.sqrt(var + eps)
    y = yr.reshape(B, C, H, W)
    return y * gamma[None, :, None, None] + beta[None, :, None, None]


def reference_forward(x, p):
    dn = ('NCHW', 'OIHW', 'NCHW')
    y = lax.conv_general_dilated(x, p['w1'], (1, 1), ((1, 1), (1, 1)),
                                 dimension_numbers=dn, feature_group_count=4)
    y = y + p['b1'][None, :, None, None]
    y = lax.reduce_window(y, -jnp.inf, lax.max, (1, 1, 2, 2), (1, 1, 2, 2), 'VALID')
    y = jax.nn.relu(_group_norm_ref(y, 4, p['gamma1'], p['beta1']))
    y = lax.conv_general_dilated(y, p['w2'], (1, 1), ((0, 0), (0, 0)),
                                 dimension_numbers=dn, feature_group_count=4)
    y = y + p['b2'][None, :, None, None]
    y = lax.reduce_window(y, -jnp.inf, lax.max, (1, 1, 2, 2), (1, 1, 2, 2), 'VALID')
    y = jax.nn.relu(_group_norm_ref(y, 32, p['gamma2'], p['beta2']))
    y = y.reshape(y.shape[0], -1)
    y = jax.nn.relu(y @ p['fw1'].T + p['fb1'])
    return y @ p['fw2'].T + p['fb2']


if __name__ == "__main__":
    key = jax.random.PRNGKey(0)
    kx, kp = jax.random.split(key)

    # NCHW input, shapes fixed by the module (flatten -> 256 requires a 20x10 board)
    x = jax.random.normal(kx, (2, 4, 20, 10), jnp.float32)

    torch_params = init_torch_params(kp, N_OUT)
    kernel_params = to_kernel_params(torch_params)

    out = jax.block_until_ready(qcnn_forward(x, kernel_params, n_out=N_OUT))

    ref = jax.block_until_ready(reference_forward(x, torch_params))
    # bf16 MXU operands (conv1/conv2/fc1 + input); fc2 kept f32 -> ~1e-3 abs error expected.
    np.testing.assert_allclose(np.asarray(out), np.asarray(ref), rtol=2e-2, atol=2e-2)

    print("KERNEL_OK")
</pallas_src>

<mosaic_0001>
module attributes {stable_mosaic.version = 11 : i64} {
  func.func @_qcnn_kernel(%arg0: i32, %arg1: memref<20x8x144xbf16, #tpu.memory_space<vmem>>, %arg2: memref<144x256xbf16, #tpu.memory_space<vmem>>, %arg3: memref<128x128xf32, #tpu.memory_space<vmem>>, %arg4: memref<256x128xbf16, #tpu.memory_space<vmem>>, %arg5: memref<64x64xf32, #tpu.memory_space<vmem>>, %arg6: memref<256x128xbf16, #tpu.memory_space<vmem>>, %arg7: memref<128x128xf32, #tpu.memory_space<vmem>>, %arg8: memref<8x128xf32, #tpu.memory_space<vmem>>, %arg9: memref<8x128xf32, #tpu.memory_space<vmem>>) attributes {dimension_semantics = [#tpu.dimension_semantics<parallel>], iteration_bounds = array<i64: 1>, scalar_prefetch = 0 : i64, scratch_operands = 0 : i64, tpu.core_type = #tpu.core_type<tc>, window_params = [{transform_indices = @transform_0, window_bounds = array<i64: 20, 8, 144>}, {pipeline_mode = #tpu.pipeline_mode<synchronous>, transform_indices = @transform_1, window_bounds = array<i64: 144, 256>}, {pipeline_mode = #tpu.pipeline_mode<synchronous>, transform_indices = @transform_2, window_bounds = array<i64: 128, 128>}, {pipeline_mode = #tpu.pipeline_mode<synchronous>, transform_indices = @transform_3, window_bounds = array<i64: 256, 128>}, {pipeline_mode = #tpu.pipeline_mode<synchronous>, transform_indices = @transform_4, window_bounds = array<i64: 64, 64>}, {pipeline_mode = #tpu.pipeline_mode<synchronous>, transform_indices = @transform_5, window_bounds = array<i64: 256, 128>}, {pipeline_mode = #tpu.pipeline_mode<synchronous>, transform_indices = @transform_6, window_bounds = array<i64: 128, 128>}, {pipeline_mode = #tpu.pipeline_mode<synchronous>, transform_indices = @transform_7, window_bounds = array<i64: 8, 128>}, {transform_indices = @transform_8, window_bounds = array<i64: 8, 128>}]} {
    %c0 = arith.constant 0 : index
    %c0_0 = arith.constant 0 : index
    %0 = vector.load %arg8[%c0, %c0_0] : memref<8x128xf32, #tpu.memory_space<vmem>>, vector<8x128xf32>
    %1 = vector.extract_strided_slice %0 {offsets = [0, 0], sizes = [1, 128], strides = [1, 1]} : vector<8x128xf32> to vector<1x128xf32>
    %2 = vector.extract_strided_slice %0 {offsets = [1, 0], sizes = [1, 128], strides = [1, 1]} : vector<8x128xf32> to vector<1x128xf32>
    %3 = vector.extract_strided_slice %0 {offsets = [2, 0], sizes = [1, 128], strides = [1, 1]} : vector<8x128xf32> to vector<1x128xf32>
    %4 = vector.extract_strided_slice %0 {offsets = [3, 0], sizes = [1, 128], strides = [1, 1]} : vector<8x128xf32> to vector<1x128xf32>
    %5 = vector.extract_strided_slice %0 {offsets = [4, 0], sizes = [1, 128], strides = [1, 1]} : vector<8x128xf32> to vector<1x128xf32>
    %6 = vector.extract_strided_slice %0 {offsets = [5, 0], sizes = [1, 64], strides = [1, 1]} : vector<8x128xf32> to vector<1x64xf32>
    %7 = vector.extract_strided_slice %0 {offsets = [6, 0], sizes = [1, 64], strides = [1, 1]} : vector<8x128xf32> to vector<1x64xf32>
    %8 = vector.extract_strided_slice %0 {offsets = [7, 0], sizes = [1, 64], strides = [1, 1]} : vector<8x128xf32> to vector<1x64xf32>
    %c0_1 = arith.constant 0 : index
    %c0_2 = arith.constant 0 : index
    %c0_3 = arith.constant 0 : index
    %9 = vector.load %arg1[%c0_1, %c0_2, %c0_3] : memref<20x8x144xbf16, #tpu.memory_space<vmem>>, vector<20x8x144xbf16>
    %10 = vector.shape_cast %9 : vector<20x8x144xbf16> to vector<160x144xbf16>
    %c0_4 = arith.constant 0 : index
    %c0_5 = arith.constant 0 : index
    %11 = vector.load %arg2[%c0_4, %c0_5] : memref<144x256xbf16, #tpu.memory_space<vmem>>, vector<144x256xbf16>
    %cst = arith.constant dense<0.000000e+00> : vector<160x256xf32>
    %12 = tpu.matmul %10, %11, %cst {dimension_numbers = #tpu.dot_dimension_numbers<[1], [0], [0], [1], [0, 0, 1, 1], [], []>} : vector<160x144xbf16>, vector<144x256xbf16>, vector<160x256xf32> -> vector<160x256xf32>
    %13 = vector.extract_strided_slice %12 {offsets = [0, 0], sizes = [160, 128], strides = [1, 1]} : vector<160x256xf32> to vector<160x128xf32>
    %14 = vector.extract_strided_slice %12 {offsets = [0, 128], sizes = [160, 128], strides = [1, 1]} : vector<160x256xf32> to vector<160x128xf32>
    %15 = arith.maximumf %13, %14 : vector<160x128xf32>
    %16 = vector.shape_cast %15 : vector<160x128xf32> to vector<10x2x8x128xf32>
    %cst_6 = arith.constant dense<0xFF800000> : vector<10x8x128xf32>
    %17 = vector.multi_reduction <maximumf>, %16, %cst_6 [1] : vector<10x2x8x128xf32> to vector<10x8x128xf32>
    %18 = vector.shape_cast %1 : vector<1x128xf32> to vector<1x1x128xf32>
    %19 = vector.broadcast %18 : vector<1x1x128xf32> to vector<10x8x128xf32>
    %20 = arith.addf %17, %19 : vector<10x8x128xf32>
    %cst_7 = arith.constant dense<0.000000e+00> : vector<8x128xf32>
    %21 = vector.multi_reduction <add>, %20, %cst_7 [0] : vector<10x8x128xf32> to vector<8x128xf32>
    %22 = arith.mulf %20, %20 : vector<10x8x128xf32>
    %cst_8 = arith.constant dense<0.000000e+00> : vector<8x128xf32>
    %23 = vector.multi_reduction <add>, %22, %cst_8 [0] : vector<10x8x128xf32> to vector<8x128xf32>
    %c0_9 = arith.constant 0 : index
    %c0_10 = arith.constant 0 : index
    %24 = vector.load %arg3[%c0_9, %c0_10] : memref<128x128xf32, #tpu.memory_space<vmem>>, vector<128x128xf32>
    %cst_11 = arith.constant dense<0.000000e+00> : vector<8x128xf32>
    %25 = tpu.matmul %21, %24, %cst_11 {dimension_numbers = #tpu.dot_dimension_numbers<[1], [0], [0], [1], [0, 0, 1, 1], [], []>} : vector<8x128xf32>, vector<128x128xf32>, vector<8x128xf32> -> vector<8x128xf32>
    %c0_12 = arith.constant 0 : index
    %c0_13 = arith.constant 0 : index
    %26 = vector.load %arg3[%c0_12, %c0_13] : memref<128x128xf32, #tpu.memory_space<vmem>>, vector<128x128xf32>
    %cst_14 = arith.constant dense<0.000000e+00> : vector<8x128xf32>
    %27 = tpu.matmul %23, %26, %cst_14 {dimension_numbers = #tpu.dot_dimension_numbers<[1], [0], [0], [1], [0, 0, 1, 1], [], []>} : vector<8x128xf32>, vector<128x128xf32>, vector<8x128xf32> -> vector<8x128xf32>
    %cst_15 = arith.constant 3.200000e+02 : f32
    %28 = vector.broadcast %cst_15 : f32 to vector<8x128xf32>
    %29 = arith.divf %25, %28 : vector<8x128xf32>
    %cst_16 = arith.constant 3.200000e+02 : f32
    %30 = vector.broadcast %cst_16 : f32 to vector<8x128xf32>
    %31 = arith.divf %27, %30 : vector<8x128xf32>
    %32 = arith.mulf %29, %29 : vector<8x128xf32>
    %33 = arith.subf %31, %32 : vector<8x128xf32>
    %cst_17 = arith.constant 0.000000e+00 : f32
    %34 = vector.broadcast %cst_17 : f32 to vector<8x128xf32>
    %35 = arith.maximumf %33, %34 : vector<8x128xf32>
    %cst_18 = arith.constant 9.99999974E-6 : f32
    %36 = vector.broadcast %cst_18 : f32 to vector<8x128xf32>
    %37 = arith.addf %35, %36 : vector<8x128xf32>
    %38 = math.rsqrt %37 : vector<8x128xf32>
    %39 = vector.broadcast %2 : vector<1x128xf32> to vector<8x128xf32>
    %40 = arith.mulf %38, %39 : vector<8x128xf32>
    %41 = arith.mulf %29, %40 : vector<8x128xf32>
    %42 = vector.broadcast %3 : vector<1x128xf32> to vector<8x128xf32>
    %43 = arith.subf %42, %41 : vector<8x128xf32>
    %44 = vector.shape_cast %40 : vector<8x128xf32> to vector<1x8x128xf32>
    %45 = vector.broadcast %44 : vector<1x8x128xf32> to vector<10x8x128xf32>
    %46 = arith.mulf %20, %45 : vector<10x8x128xf32>
    %47 = vector.shape_cast %43 : vector<8x128xf32> to vector<1x8x128xf32>
    %48 = vector.broadcast %47 : vector<1x8x128xf32> to vector<10x8x128xf32>
    %49 = arith.addf %46, %48 : vector<10x8x128xf32>
    %cst_19 = arith.constant 0.000000e+00 : f32
    %50 = vector.broadcast %cst_19 : f32 to vector<10x8x128xf32>
    %51 = arith.maximumf %49, %50 : vector<10x8x128xf32>
    %52 = arith.truncf %51 : vector<10x8x128xf32> to vector<10x8x128xbf16>
    %53 = vector.extract_strided_slice %52 {offsets = [0, 0, 0], sizes = [8, 8, 128], strides = [1, 1, 1]} : vector<10x8x128xbf16> to vector<8x8x128xbf16>
    %54 = vector.shape_cast %53 : vector<8x8x128xbf16> to vector<64x128xbf16>
    %55 = vector.extract_strided_slice %52 {offsets = [1, 0, 0], sizes = [8, 8, 128], strides = [1, 1, 1]} : vector<10x8x128xbf16> to vector<8x8x128xbf16>
    %56 = vector.shape_cast %55 : vector<8x8x128xbf16> to vector<64x128xbf16>
    %57 = tpu.concatenate %54, %56 in 1 : vector<64x128xbf16>, vector<64x128xbf16> -> vector<64x256xbf16>
    %c0_20 = arith.constant 0 : index
    %c0_21 = arith.constant 0 : index
    %58 = vector.load %arg4[%c0_20, %c0_21] : memref<256x128xbf16, #tpu.memory_space<vmem>>, vector<256x128xbf16>
    %cst_22 = arith.constant dense<0.000000e+00> : vector<64x128xf32>
    %59 = tpu.matmul %57, %58, %cst_22 {dimension_numbers = #tpu.dot_dimension_numbers<[1], [0], [0], [1], [0, 0, 1, 1], [], []>} : vector<64x256xbf16>, vector<256x128xbf16>, vector<64x128xf32> -> vector<64x128xf32>
    %60 = vector.extract_strided_slice %59 {offsets = [0, 0], sizes = [64, 64], strides = [1, 1]} : vector<64x128xf32> to vector<64x64xf32>
    %61 = vector.extract_strided_slice %59 {offsets = [0, 64], sizes = [64, 64], strides = [1, 1]} : vector<64x128xf32> to vector<64x64xf32>
    %62 = arith.maximumf %60, %61 : vector<64x64xf32>
    %63 = vector.shape_cast %62 : vector<64x64xf32> to vector<4x2x8x64xf32>
    %cst_23 = arith.constant dense<0xFF800000> : vector<4x8x64xf32>
    %64 = vector.multi_reduction <maximumf>, %63, %cst_23 [1] : vector<4x2x8x64xf32> to vector<4x8x64xf32>
    %65 = vector.shape_cast %6 : vector<1x64xf32> to vector<1x1x64xf32>
    %66 = vector.broadcast %65 : vector<1x1x64xf32> to vector<4x8x64xf32>
    %67 = arith.addf %64, %66 : vector<4x8x64xf32>
    %cst_24 = arith.constant dense<0.000000e+00> : vector<8x64xf32>
    %68 = vector.multi_reduction <add>, %67, %cst_24 [0] : vector<4x8x64xf32> to vector<8x64xf32>
    %69 = arith.mulf %67, %67 : vector<4x8x64xf32>
    %cst_25 = arith.constant dense<0.000000e+00> : vector<8x64xf32>
    %70 = vector.multi_reduction <add>, %69, %cst_25 [0] : vector<4x8x64xf32> to vector<8x64xf32>
    %c0_26 = arith.constant 0 : index
    %c0_27 = arith.constant 0 : index
    %71 = vector.load %arg5[%c0_26, %c0_27] : memref<64x64xf32, #tpu.memory_space<vmem>>, vector<64x64xf32>
    %cst_28 = arith.constant dense<0.000000e+00> : vector<8x64xf32>
    %72 = tpu.matmul %68, %71, %cst_28 {dimension_numbers = #tpu.dot_dimension_numbers<[1], [0], [0], [1], [0, 0, 1, 1], [], []>} : vector<8x64xf32>, vector<64x64xf32>, vector<8x64xf32> -> vector<8x64xf32>
    %c0_29 = arith.constant 0 : index
    %c0_30 = arith.constant 0 : index
    %73 = vector.load %arg5[%c0_29, %c0_30] : memref<64x64xf32, #tpu.memory_space<vmem>>, vector<64x64xf32>
    %cst_31 = arith.constant dense<0.000000e+00> : vector<8x64xf32>
    %74 = tpu.matmul %70, %73, %cst_31 {dimension_numbers = #tpu.dot_dimension_numbers<[1], [0], [0], [1], [0, 0, 1, 1], [], []>} : vector<8x64xf32>, vector<64x64xf32>, vector<8x64xf32> -> vector<8x64xf32>
    %cst_32 = arith.constant 8.000000e+00 : f32
    %75 = vector.broadcast %cst_32 : f32 to vector<8x64xf32>
    %76 = arith.divf %72, %75 : vector<8x64xf32>
    %cst_33 = arith.constant 8.000000e+00 : f32
    %77 = vector.broadcast %cst_33 : f32 to vector<8x64xf32>
    %78 = arith.divf %74, %77 : vector<8x64xf32>
    %79 = arith.mulf %76, %76 : vector<8x64xf32>
    %80 = arith.subf %78, %79 : vector<8x64xf32>
    %cst_34 = arith.constant 0.000000e+00 : f32
    %81 = vector.broadcast %cst_34 : f32 to vector<8x64xf32>
    %82 = arith.maximumf %80, %81 : vector<8x64xf32>
    %cst_35 = arith.constant 9.99999974E-6 : f32
    %83 = vector.broadcast %cst_35 : f32 to vector<8x64xf32>
    %84 = arith.addf %82, %83 : vector<8x64xf32>
    %85 = math.rsqrt %84 : vector<8x64xf32>
    %86 = vector.broadcast %7 : vector<1x64xf32> to vector<8x64xf32>
    %87 = arith.mulf %85, %86 : vector<8x64xf32>
    %88 = arith.mulf %76, %87 : vector<8x64xf32>
    %89 = vector.broadcast %8 : vector<1x64xf32> to vector<8x64xf32>
    %90 = arith.subf %89, %88 : vector<8x64xf32>
    %91 = vector.shape_cast %87 : vector<8x64xf32> to vector<1x8x64xf32>
    %92 = vector.broadcast %91 : vector<1x8x64xf32> to vector<4x8x64xf32>
    %93 = arith.mulf %67, %92 : vector<4x8x64xf32>
    %94 = vector.shape_cast %90 : vector<8x64xf32> to vector<1x8x64xf32>
    %95 = vector.broadcast %94 : vector<1x8x64xf32> to vector<4x8x64xf32>
    %96 = arith.addf %93, %95 : vector<4x8x64xf32>
    %cst_36 = arith.constant 0.000000e+00 : f32
    %97 = vector.broadcast %cst_36 : f32 to vector<4x8x64xf32>
    %98 = arith.maximumf %96, %97 : vector<4x8x64xf32>
    %99 = arith.truncf %98 : vector<4x8x64xf32> to vector<4x8x64xbf16>
    %100 = vector.extract_strided_slice %99 {offsets = [0, 0, 0], sizes = [1, 8, 64], strides = [1, 1, 1]} : vector<4x8x64xbf16> to vector<1x8x64xbf16>
    %101 = vector.shape_cast %100 : vector<1x8x64xbf16> to vector<8x64xbf16>
    %102 = vector.extract_strided_slice %99 {offsets = [1, 0, 0], sizes = [1, 8, 64], strides = [1, 1, 1]} : vector<4x8x64xbf16> to vector<1x8x64xbf16>
    %103 = vector.shape_cast %102 : vector<1x8x64xbf16> to vector<8x64xbf16>
    %104 = vector.extract_strided_slice %99 {offsets = [2, 0, 0], sizes = [1, 8, 64], strides = [1, 1, 1]} : vector<4x8x64xbf16> to vector<1x8x64xbf16>
    %105 = vector.shape_cast %104 : vector<1x8x64xbf16> to vector<8x64xbf16>
    %106 = vector.extract_strided_slice %99 {offsets = [3, 0, 0], sizes = [1, 8, 64], strides = [1, 1, 1]} : vector<4x8x64xbf16> to vector<1x8x64xbf16>
    %107 = vector.shape_cast %106 : vector<1x8x64xbf16> to vector<8x64xbf16>
    %108 = tpu.concatenate %101, %103, %105, %107 in 1 : vector<8x64xbf16>, vector<8x64xbf16>, vector<8x64xbf16>, vector<8x64xbf16> -> vector<8x256xbf16>
    %c0_37 = arith.constant 0 : index
    %c0_38 = arith.constant 0 : index
    %109 = vector.load %arg6[%c0_37, %c0_38] : memref<256x128xbf16, #tpu.memory_space<vmem>>, vector<256x128xbf16>
    %cst_39 = arith.constant dense<0.000000e+00> : vector<8x128xf32>
    %110 = tpu.matmul %108, %109, %cst_39 {dimension_numbers = #tpu.dot_dimension_numbers<[1], [0], [0], [1], [0, 0, 1, 1], [], []>} : vector<8x256xbf16>, vector<256x128xbf16>, vector<8x128xf32> -> vector<8x128xf32>
    %111 = vector.broadcast %4 : vector<1x128xf32> to vector<8x128xf32>
    %112 = arith.addf %110, %111 : vector<8x128xf32>
    %cst_40 = arith.constant 0.000000e+00 : f32
    %113 = vector.broadcast %cst_40 : f32 to vector<8x128xf32>
    %114 = arith.maximumf %112, %113 : vector<8x128xf32>
    %c0_41 = arith.constant 0 : index
    %c0_42 = arith.constant 0 : index
    %115 = vector.load %arg7[%c0_41, %c0_42] : memref<128x128xf32, #tpu.memory_space<vmem>>, vector<128x128xf32>
    %cst_43 = arith.constant dense<0.000000e+00> : vector<8x128xf32>
    %116 = tpu.matmul %114, %115, %cst_43 {dimension_numbers = #tpu.dot_dimension_numbers<[1], [0], [0], [1], [0, 0, 1, 1], [], []>} : vector<8x128xf32>, vector<128x128xf32>, vector<8x128xf32> -> vector<8x128xf32>
    %117 = vector.broadcast %5 : vector<1x128xf32> to vector<8x128xf32>
    %118 = arith.addf %116, %117 : vector<8x128xf32>
    %c0_44 = arith.constant 0 : index
    %c0_45 = arith.constant 0 : index
    %119 = vector.load %arg9[%c0_44, %c0_45] : memref<8x128xf32, #tpu.memory_space<vmem>>, vector<8x128xf32>
    tpu.vector_store %arg9[%c0_44, %c0_45], %118 {strides = array<i32>} : memref<8x128xf32, #tpu.memory_space<vmem>>, vector<8x128xf32>,
    return
  }
  func.func @transform_0(%arg0: i32) -> (i32, i32, i32) {
    %c0_i32 = arith.constant 0 : i32
    %c0_i32_0 = arith.constant 0 : i32
    %c0_i32_1 = arith.constant 0 : i32
    return %c0_i32, %arg0, %c0_i32_0 : i32, i32, i32
  }
  func.func @transform_1(%arg0: i32) -> (i32, i32) {
    %c0_i32 = arith.constant 0 : i32
    %c0_i32_0 = arith.constant 0 : i32
    %c0_i32_1 = arith.constant 0 : i32
    return %c0_i32, %c0_i32_0 : i32, i32
  }
  func.func @transform_2(%arg0: i32) -> (i32, i32) {
    %c0_i32 = arith.constant 0 : i32
    %c0_i32_0 = arith.constant 0 : i32
    %c0_i32_1 = arith.constant 0 : i32
    return %c0_i32, %c0_i32_0 : i32, i32
  }
  func.func @transform_3(%arg0: i32) -> (i32, i32) {
    %c0_i32 = arith.constant 0 : i32
    %c0_i32_0 = arith.constant 0 : i32
    %c0_i32_1 = arith.constant 0 : i32
    return %c0_i32, %c0_i32_0 : i32, i32
  }
  func.func @transform_4(%arg0: i32) -> (i32, i32) {
    %c0_i32 = arith.constant 0 : i32
    %c0_i32_0 = arith.constant 0 : i32
    %c0_i32_1 = arith.constant 0 : i32
    return %c0_i32, %c0_i32_0 : i32, i32
  }
  func.func @transform_5(%arg0: i32) -> (i32, i32) {
    %c0_i32 = arith.constant 0 : i32
    %c0_i32_0 = arith.constant 0 : i32
    %c0_i32_1 = arith.constant 0 : i32
    return %c0_i32, %c0_i32_0 : i32, i32
  }
  func.func @transform_6(%arg0: i32) -> (i32, i32) {
    %c0_i32 = arith.constant 0 : i32
    %c0_i32_0 = arith.constant 0 : i32
    %c0_i32_1 = arith.constant 0 : i32
    return %c0_i32, %c0_i32_0 : i32, i32
  }
  func.func @transform_7(%arg0: i32) -> (i32, i32) {
    %c0_i32 = arith.constant 0 : i32
    %c0_i32_0 = arith.constant 0 : i32
    %c0_i32_1 = arith.constant 0 : i32
    return %c0_i32, %c0_i32_0 : i32, i32
  }
  func.func @transform_8(%arg0: i32) -> (i32, i32) {
    %c0_i32 = arith.constant 0 : i32
    %c0_i32_0 = arith.constant 0 : i32
    return %arg0, %c0_i32 : i32, i32
  }
}

</mosaic_0001>

<bundles_post_ra>
// kernel: tpu_custom_call.1
= control target key start
LH: loop header
LB: loop body
LE: loop exit
PB: predicated region body
PF: predicated region fallthrough
CT: control target
= control target key end

     0   :  { %13 = vsyncpa [#allocation3], 0  ;;  %s2372_s0 = inlined_call_operand.hbm [shape: bf16[20,8,144], index: 0, kind: input, shape index: {}]   ;;  %s2373_s1 = inlined_call_operand.hbm [shape: bf16[144,256], index: 1, kind: input, shape index: {}]   ;;  %s2374_s2 = inlined_call_operand.hbm [shape: f32[128,128], index: 2, kind: input, shape index: {}]   ;;  %s2375_s3 = inlined_call_operand.hbm [shape: bf16[256,128], index: 3, kind: input, shape index: {}]   ;;  %s2376_s4 = inlined_call_operand.hbm [shape: f32[64,64], index: 4, kind: input, shape index: {}]   ;;  %s2377_s5 = inlined_call_operand.hbm [shape: bf16[256,128], index: 5, kind: input, shape index: {}]   ;;  %s2378_s6 = inlined_call_operand.hbm [shape: f32[128,128], index: 6, kind: input, shape index: {}]   ;;  %s2379_s7 = inlined_call_operand.hbm [shape: f32[8,128], index: 7, kind: input, shape index: {}]   ;;  %s2380_s8 = inlined_call_operand.hbm [shape: f32[8,128], index: 8, kind: output, shape index: {}]  }
   0x1   :  { %14 = vsyncpa [#allocation6], 0 }
   0x2   :  { %15 = vsyncpa [#allocation9], 0 }
   0x3   :  { %16 = vsyncpa [#allocation12], 0 }
   0x4   :  { %17 = vsyncpa [#allocation15], 0 }
   0x5   :  { %18 = vsyncpa [#allocation4], 0  ;;  %s36_s29 = sshll.u32 %s2373_s1, 4  ;;  %s2079_s30 = smov [#allocation5]   ;;  %s37_s29 = int_to_ptr.hbm [resolvable:$true] %s36_s29 }
   0x6   :  { %s38_s9 = sshll.u32 %s2079_s30, 4  ;;  %s62_s12 = sshll.u32 %s2375_s3, 4  ;;  %s39_s9 = int_to_ptr.vmem [resolvable:$true] %s38_s9  ;;  %s63_s12 = int_to_ptr.hbm [resolvable:$true] %s62_s12 }
   0x7   :  { %s2080_s13 = smov 128   ;;  %s2081_s14 = smov 8  }
   0x8   :  { %44 = dma.hbm_to_vmem [thread:$0]  %s37_s29, 2304, %s39_s9, [#allocation6], %s2080_s13, %s2080_s13, %s2081_s14  }
   0x9   :  { %s2082_s15 = smov [#allocation8]   ;;  %s2083_s17 = smov 64  }
   0xa   :  { %s64_s16 = sshll.u32 %s2082_s15, 4  ;;  %s2084_s1 = smov 4   ;;  %s65_s16 = int_to_ptr.vmem [resolvable:$true] %s64_s16 }
   0xb   :  { %70 = dma.hbm_to_vmem [thread:$0]  %s63_s12, 2048, %s65_s16, [#allocation9], %s2083_s17, %s2083_s17, %s2084_s1  }
   0xc   :  { %s88_s20 = sshll.u32 %s2377_s5, 4  ;;  %s2085_s3 = smov [#allocation11]   ;;  %s89_s20 = int_to_ptr.hbm [resolvable:$true] %s88_s20 }
   0xd   :  { %s90_s21 = sshll.u32 %s2085_s3, 4  ;;  %s23_s24 = sshll.u32 %s2372_s0, 4  ;;  %s91_s21 = int_to_ptr.vmem [resolvable:$true] %s90_s21  ;;  %s24_s24 = int_to_ptr.hbm [resolvable:$true] %s23_s24 }
   0xe   :  { %96 = dma.hbm_to_vmem [thread:$0]  %s89_s20, 2048, %s91_s21, [#allocation12], %s2083_s17, %s2083_s17, %s2084_s1  }
   0xf   :  { %s2086_s25 = smov [#allocation2]   ;;  %s49_s29 = sshll.u32 %s2374_s2, 4  ;;  %s50_s29 = int_to_ptr.hbm [resolvable:$true] %s49_s29 }
  0x10   :  { %s25_s26 = sshll.u32 %s2086_s25, 4  ;;  %s75_s0 = sshll.u32 %s2376_s4, 4  ;;  %s26_s26 = int_to_ptr.vmem [resolvable:$true] %s25_s26  ;;  %s76_s0 = int_to_ptr.hbm [resolvable:$true] %s75_s0 }
  0x11   :  { %31 = dma.hbm_to_vmem [thread:$0]  %s24_s24, 2560, %s26_s26, [#allocation3], %s2080_s13, %s2080_s13, %s2081_s14  }
  0x12   :  { %s2087_s9 = smov [#allocation7]   ;;  %s2088_s11 = smov [#allocation10]  }
  0x13   :  { %s51_s10 = sshll.u32 %s2087_s9, 4  ;;  %s77_s2 = sshll.u32 %s2088_s11, 4  ;;  %s52_s10 = int_to_ptr.vmem [resolvable:$true] %s51_s10  ;;  %s78_s2 = int_to_ptr.vmem [resolvable:$true] %s77_s2 }
  0x14   :  { %57 = dma.hbm_to_vmem [thread:$0]  %s50_s29, 2048, %s52_s10, [#allocation6], %s2080_s13, %s2080_s13, %s2081_s14  }
  0x15   :  { %s101_s16 = sshll.u32 %s2378_s6, 4  ;;  %s115_s18 = sshll.u32 %s2379_s7, 4  ;;  %s102_s16 = int_to_ptr.hbm [resolvable:$true] %s101_s16  ;;  %s116_s18 = int_to_ptr.hbm [resolvable:$true] %s115_s18 }
  0x16   :  { %83 = dma.hbm_to_vmem [thread:$0]  %s76_s0, 1024, %s78_s2, [#allocation9], %s2080_s13, %s2080_s13, %s2081_s14  }
  0x17   :  { %s2089_s19 = smov [#allocation13]   ;;  %s2090_s3 = smov [#allocation14]  }
  0x18   :  { %s103_s20 = sshll.u32 %s2089_s19, 4  ;;  %s117_s6 = sshll.u32 %s2090_s3, 4  ;;  %s104_s20 = int_to_ptr.vmem [resolvable:$true] %s103_s20  ;;  %s118_s6 = int_to_ptr.vmem [resolvable:$true] %s117_s6 }
  0x19   :  { %109 = dma.hbm_to_vmem [thread:$0]  %s102_s16, 2048, %s104_s20, [#allocation12], %s2080_s13, %s2080_s13, %s2081_s14  }
  0x1a   :  { %120 = dma.hbm_to_vmem [thread:$0]  %s116_s18, 128, %s118_s6, [#allocation15]  }
  0x1b   :  { %2067 = dma.done.wait [#allocation3], 2560  }
  0x1c   :  { %2068 = vsyncadd [#allocation3], 4294964736 }
  0x1d   :  { %2069 = dma.done.wait [#allocation6], 4352  }
  0x1e   :  { %2070 = vsyncadd [#allocation6], 4294962944 }
  0x1f   :  { %2071 = dma.done.wait [#allocation9], 3072  }
  0x20   :  { %2072 = vsyncadd [#allocation9], 4294964224 }
  0x21   :  { %2073 = dma.done.wait [#allocation12], 4096  }
  0x22   :  { %2074 = vsyncadd [#allocation12], 4294963200 }
  0x23   :  { %2075 = dma.done.wait [#allocation15], 128  }
  0x24   :  { %2076 = vsyncadd [#allocation15], 4294967168  ;;  %v1594_v0 = vld [vmem:[#allocation5 + $0x70] sm:$0xf]  ;;  %v1793_v1 = vld [vmem:[#allocation5 + $0x74] sm:$0xf0] }
  0x25   :  { %v1792_v2 = vld [vmem:[#allocation5 + $0x74] sm:$0xf]  ;;  %v1595_v3 = vor.u32 %v1793_v1, %v1594_v0  ;;  %v1596_v4 = vld [vmem:[#allocation5 + $0x78] sm:$0xf0]  ;;  %v1586_v5 = vld [vmem:[#allocation5 + $0x60] sm:$0xf] }
  0x26   :  { %v1791_v6 = vld [vmem:[#allocation5 + $0x64] sm:$0xf0]  ;;  %v1599_v7 = vor.u32 %v1792_v2, %v1596_v4  ;;  %v1790_v8 = vld [vmem:[#allocation5 + $0x64] sm:$0xf]  ;;  %v1588_v9 = vld [vmem:[#allocation5 + $0x68] sm:$0xf0] }
  0x27   :  { %404 = vmatpush.bf16.msra.mxu0 %v1595_v3  ;;  %v1587_v10 = vor.u32 %v1791_v6, %v1586_v5  ;;  %v1591_v11 = vor.u32 %v1790_v8, %v1588_v9  ;;  %v1578_v12 = vld [vmem:[#allocation5 + $0x50] sm:$0xf]  ;;  %v1789_v13 = vld [vmem:[#allocation5 + $0x54] sm:$0xf0]  ;;  %v1788_v14 = vld [vmem:[#allocation5 + $0x54] sm:$0xf] }
  0x28   :  { %522 = vmatpush.bf16.msra.mxu2 %v1599_v7  ;;  %v1580_v15 = vld [vmem:[#allocation5 + $0x58] sm:$0xf0]  ;;  %v1579_v16 = vor.u32 %v1789_v13, %v1578_v12  ;;  %v1570_v17 = vld [vmem:[#allocation5 + $0x40] sm:$0xf]  ;;  %v1787_v18 = vld [vmem:[#allocation5 + $0x44] sm:$0xf0] }
  0x29   :  { %v1583_v19 = vor.u32 %v1788_v14, %v1580_v15  ;;  %v1794_v20 = vld [vmem:[#allocation5 + $0x84] sm:$0xf]  ;;  %v1604_v21 = vld [vmem:[#allocation5 + $0x88] sm:$0xf0]  ;;  %v1602_v28 = vld [vmem:[#allocation5 + $0x80] sm:$0xf]  ;;  %v1571_v29 = vor.u32 %v1787_v18, %v1570_v17 }
  0x2a   :  { %v1758_v22 = vld [vmem:[#allocation2 + $0x4] sm:$0xf]  ;;  %v1572_v24 = vld [vmem:[#allocation5 + $0x48] sm:$0xf0]  ;;  %v1607_v25 = vor.u32 %v1794_v20, %v1604_v21  ;;  %vm373_vm0 = vcmask 130048   ;;  %vm1089_vm5 = vcmask 523264  }
  0x2b   :  { %405 = vmatpush.bf16.msra.mxu0 %v1587_v10  ;;  %v1786_v23 = vld [vmem:[#allocation5 + $0x44] sm:$0xf]  ;;  %v1460_v26 = vld [vmem:[#allocation2 + $0x8] sm:$0xf0]  ;;  %v1795_v30 = vld [vmem:[#allocation5 + $0x84] sm:$0xf0] }
  0x2c   :  { %523 = vmatpush.bf16.msra.mxu2 %v1591_v11  ;;  %v1463_v27 = vor.u32 %v1758_v22, %v1460_v26  ;;  %588 = vmatpush.bf16.msra.mxu3 %v1607_v25  ;;  %v1575_v31 = vor.u32 %v1786_v23, %v1572_v24  ;;  %v1562_v32 = vld [vmem:[#allocation5 + $0x30] sm:$0xf]  ;;  %v1785_v33 = vld [vmem:[#allocation5 + $0x34] sm:$0xf0]  ;;  %v1603_v34 = vor.u32 %v1795_v30, %v1602_v28  ;;  %v1784_v35 = vld [vmem:[#allocation5 + $0x34] sm:$0xf] }
  0x2d   :  { %v1564_v36 = vld [vmem:[#allocation5 + $0x38] sm:$0xf0]  ;;  %v1563_v37 = vor.u32 %v1785_v33, %v1562_v32  ;;  %v1554_v39 = vld [vmem:[#allocation5 + $0x20] sm:$0xf]  ;;  %v1783_v40 = vld [vmem:[#allocation5 + $0x24] sm:$0xf0] }
  0x2e   :  { %470 = vmatpush.bf16.msra.mxu1 %v1603_v34  ;;  %v1567_v38 = vor.u32 %v1784_v35, %v1564_v36  ;;  %v1782_v41 = vld [vmem:[#allocation5 + $0x24] sm:$0xf]  ;;  %v1556_v42 = vld [vmem:[#allocation5 + $0x28] sm:$0xf0]  ;;  %v1555_v43 = vor.u32 %v1783_v40, %v1554_v39  ;;  %v1546_v45 = vld [vmem:[#allocation5 + $0x10] sm:$0xf] }
  0x2f   :  { %406 = vmatpush.bf16.msra.mxu0 %v1579_v16  ;;  %1618 = vmatmul.msk.bf16.vlgmr.msra.gmra.mxu3 %vm373_vm0, %v1463_v27  ;;  %v1559_v44 = vor.u32 %v1782_v41, %v1556_v42  ;;  %v1781_v46 = vld [vmem:[#allocation5 + $0x14] sm:$0xf0]  ;;  %v1780_v47 = vld [vmem:[#allocation5 + $0x14] sm:$0xf]  ;;  %v1548_v48 = vld [vmem:[#allocation5 + $0x18] sm:$0xf0] }
  0x30   :  { %524 = vmatpush.bf16.msra.mxu2 %v1583_v19  ;;  %v1547_v49 = vor.u32 %v1781_v46, %v1546_v45  ;;  %v1760_v50 = vld [vmem:[#allocation2 + $0x14] sm:$0xf]  ;;  %v1468_v51 = vld [vmem:[#allocation2 + $0x18] sm:$0xf0]  ;;  %v1551_v52 = vor.u32 %v1780_v47, %v1548_v48  ;;  %v1538_v53 = vld [vmem:[#allocation5] sm:$0xf] }
  0x31   :  { %1608 = vmatmul.msk.bf16.vlgmr.msra.gmra.mxu1 %vm373_vm0, %v1463_v27  ;;  %v1779_v54 = vld [vmem:[#allocation5 + $0x4] sm:$0xf0]  ;;  %v1778_v55 = vld [vmem:[#allocation5 + $0x4] sm:$0xf]  ;;  %v1540_v56 = vld [vmem:[#allocation5 + $0x8] sm:$0xf0]  ;;  %v1471_v57 = vor.u32 %v1760_v50, %v1468_v51 }
  0x32   :  { %v1539_v58 = vor.u32 %v1779_v54, %v1538_v53  ;;  %v1458_v59 = vld [vmem:[#allocation2] sm:$0xf]  ;;  %v1759_v60 = vld [vmem:[#allocation2 + $0x4] sm:$0xf0]  ;;  %v1543_v61 = vor.u32 %v1778_v55, %v1540_v56  ;;  %v1762_v63 = vld [vmem:[#allocation2 + $0x24] sm:$0xf] }
  0x33   :  { %407 = vmatpush.bf16.msra.mxu0 %v1571_v29  ;;  %v1459_v62 = vor.u32 %v1759_v60, %v1458_v59  ;;  %v1476_v0 = vld [vmem:[#allocation2 + $0x28] sm:$0xf0]  ;;  %v1466_v2 = vld [vmem:[#allocation2 + $0x10] sm:$0xf]  ;;  %v1761_v3 = vld [vmem:[#allocation2 + $0x14] sm:$0xf0] }
  0x34   :  { %525 = vmatpush.bf16.msra.mxu2 %v1575_v31  ;;  %v1479_v1 = vor.u32 %v1762_v63, %v1476_v0  ;;  %v1467_v4 = vor.u32 %v1761_v3, %v1466_v2  ;;  %v1764_v5 = vld [vmem:[#allocation2 + $0x34] sm:$0xf]  ;;  %v1484_v6 = vld [vmem:[#allocation2 + $0x38] sm:$0xf0]  ;;  %v1474_v8 = vld [vmem:[#allocation2 + $0x20] sm:$0xf] }
  0x35   :  { %v1487_v7 = vor.u32 %v1764_v5, %v1484_v6  ;;  %v1763_v9 = vld [vmem:[#allocation2 + $0x24] sm:$0xf0]  ;;  %v1766_v11 = vld [vmem:[#allocation2 + $0x44] sm:$0xf]  ;;  %v1492_v12 = vld [vmem:[#allocation2 + $0x48] sm:$0xf0] }
  0x36   :  { %v1475_v10 = vor.u32 %v1763_v9, %v1474_v8  ;;  %v1495_v13 = vor.u32 %v1766_v11, %v1492_v12  ;;  %v1482_v14 = vld [vmem:[#allocation2 + $0x30] sm:$0xf]  ;;  %v1765_v15 = vld [vmem:[#allocation2 + $0x34] sm:$0xf0]  ;;  %v1768_v17 = vld [vmem:[#allocation2 + $0x54] sm:$0xf] }
  0x37   :  { %408 = vmatpush.bf16.msra.mxu0 %v1563_v37  ;;  %v1483_v16 = vor.u32 %v1765_v15, %v1482_v14  ;;  %v1500_v18 = vld [vmem:[#allocation2 + $0x58] sm:$0xf0]  ;;  %v1490_v20 = vld [vmem:[#allocation2 + $0x40] sm:$0xf]  ;;  %v1767_v21 = vld [vmem:[#allocation2 + $0x44] sm:$0xf0] }
  0x38   :  { %526 = vmatpush.bf16.msra.mxu2 %v1567_v38  ;;  %v1503_v19 = vor.u32 %v1768_v17, %v1500_v18  ;;  %v1491_v22 = vor.u32 %v1767_v21, %v1490_v20  ;;  %v1770_v23 = vld [vmem:[#allocation2 + $0x64] sm:$0xf]  ;;  %v1508_v24 = vld [vmem:[#allocation2 + $0x68] sm:$0xf0]  ;;  %v1498_v26 = vld [vmem:[#allocation2 + $0x50] sm:$0xf] }
  0x39   :  { %v1511_v25 = vor.u32 %v1770_v23, %v1508_v24  ;;  %v1769_v27 = vld [vmem:[#allocation2 + $0x54] sm:$0xf0]  ;;  %v1772_v29 = vld [vmem:[#allocation2 + $0x74] sm:$0xf]  ;;  %v1516_v30 = vld [vmem:[#allocation2 + $0x78] sm:$0xf0] }
  0x3a   :  { %v1499_v28 = vor.u32 %v1769_v27, %v1498_v26  ;;  %v1519_v31 = vor.u32 %v1772_v29, %v1516_v30  ;;  %v1506_v32 = vld [vmem:[#allocation2 + $0x60] sm:$0xf]  ;;  %v1771_v33 = vld [vmem:[#allocation2 + $0x64] sm:$0xf0]  ;;  %v1774_v35 = vld [vmem:[#allocation2 + $0x84] sm:$0xf] }
  0x3b   :  { %409 = vmatpush.bf16.msra.mxu0 %v1555_v43  ;;  %v1507_v34 = vor.u32 %v1771_v33, %v1506_v32  ;;  %v1524_v36 = vld [vmem:[#allocation2 + $0x88] sm:$0xf0]  ;;  %v1514_v39 = vld [vmem:[#allocation2 + $0x70] sm:$0xf]  ;;  %v1773_v40 = vld [vmem:[#allocation2 + $0x74] sm:$0xf0] }
  0x3c   :  { %527 = vmatpush.bf16.msra.mxu2 %v1559_v44  ;;  %v724_v37 = vld [vmem:[#allocation7 + $0x78] sm:$0xff]  ;;  %v1527_v38 = vor.u32 %v1774_v35, %v1524_v36  ;;  %v1515_v41 = vor.u32 %v1773_v40, %v1514_v39  ;;  %v1776_v45 = vld [vmem:[#allocation2 + $0x94] sm:$0xf]  ;;  %v1532_v46 = vld [vmem:[#allocation2 + $0x98] sm:$0xf0]  ;;  %s2093_s7 = smov [#allocation16]  }
  0x3d   :  { %745 = vmatpush.msrb.mxu3 %v724_v37  ;;  %725 = vmatpush.msrb.mxu1 %v724_v37  ;;  %v723_v47 = vld [vmem:[#allocation7 + $0x70] sm:$0xff]  ;;  %v1775_v51 = vld [vmem:[#allocation2 + $0x84] sm:$0xf0]  ;;  %v722_v63 = vld [vmem:[#allocation7 + $0x68] sm:$0xff]  ;;  %s1440_s13 = sshll.u32 %s2093_s7, 4  ;;  %s1442_s21 = sshll.u32 %s2380_s8, 4  ;;  %s1441_s13 = int_to_ptr.vmem [resolvable:$true] %s1440_s13  ;;  %s1443_s21 = int_to_ptr.hbm [resolvable:$true] %s1442_s21 }
  0x3e   :  { %v1522_v50 = vld [vmem:[#allocation2 + $0x80] sm:$0xf]  ;;  %v721_v0 = vld [vmem:[#allocation7 + $0x60] sm:$0xff]  ;;  %v1777_v2 = vld [vmem:[#allocation2 + $0x94] sm:$0xf0] }
  0x3f   :  { %410 = vmatpush.bf16.msra.mxu0 %v1547_v49  ;;  %1619 = vmatmul.msk.bf16.gmra.mxu3 %vm373_vm0, %v1471_v57  ;;  %v1535_v49 = vor.u32 %v1776_v45, %v1532_v46  ;;  %v719_v20 = vld [vmem:[#allocation7 + $0x50] sm:$0xff]  ;;  %v718_v37 = vld [vmem:[#allocation7 + $0x48] sm:$0xff] }
  0x40   :  { %528 = vmatpush.bf16.msra.mxu2 %v1551_v52  ;;  %746 = vmatpush.msrb.mxu3 %v723_v47  ;;  %v1523_v52 = vor.u32 %v1775_v51, %v1522_v50 }
  0x41   :  { %1609 = vmatmul.msk.bf16.gmra.mxu1 %vm373_vm0, %v1471_v57 }
  0x42   :  { %726 = vmatpush.msrb.mxu1 %v723_v47  ;;  %747 = vmatpush.msrb.mxu3 %v722_v63 }
  0x43   :  { %411 = vmatpush.bf16.msra.mxu0 %v1539_v58 }
  0x44   :  { %529 = vmatpush.bf16.msra.mxu2 %v1543_v61  ;;  %727 = vmatpush.msrb.mxu1 %v722_v63 }
  0x45   :  { %748 = vmatpush.msrb.mxu3 %v721_v0 }
  0x46   :  { %412 = vmatmul.bf16.vlgmr.msra.gmra.mxu0 %v1459_v62  ;;  %728 = vmatpush.msrb.mxu1 %v721_v0 }
  0x47   :  { %530 = vmatmul.bf16.vlgmr.msra.gmra.mxu2 %v1459_v62 }
  0x4f   :  { %1620 = vmatmul.msk.bf16.gmra.mxu3 %vm373_vm0, %v1479_v1 }
  0x51   :  { %1610 = vmatmul.msk.bf16.gmra.mxu1 %vm373_vm0, %v1479_v1  ;;  %v1530_v1 = vld [vmem:[#allocation2 + $0x90] sm:$0xf] }
  0x56   :  { %417 = vmatmul.bf16.gmra.mxu0 %v1467_v4 }
  0x57   :  { %535 = vmatmul.bf16.gmra.mxu2 %v1467_v4  ;;  %v1531_v4 = vor.u32 %v1777_v2, %v1530_v1  ;;  %v715_v2 = vld [vmem:[#allocation7 + $0x30] sm:$0xff] }
  0x5f   :  { %1621 = vmatmul.msk.bf16.gmra.mxu3 %vm373_vm0, %v1487_v7 }
  0x61   :  { %1611 = vmatmul.msk.bf16.gmra.mxu1 %vm373_vm0, %v1487_v7 }
  0x66   :  { %422 = vmatmul.bf16.gmra.mxu0 %v1475_v10 }
  0x67   :  { %540 = vmatmul.bf16.gmra.mxu2 %v1475_v10 }
  0x6f   :  { %1622 = vmatmul.msk.bf16.gmra.mxu3 %vm373_vm0, %v1495_v13 }
  0x71   :  { %1612 = vmatmul.msk.bf16.gmra.mxu1 %vm373_vm0, %v1495_v13 }
  0x76   :  { %427 = vmatmul.bf16.gmra.mxu0 %v1483_v16 }
  0x77   :  { %545 = vmatmul.bf16.gmra.mxu2 %v1483_v16 }
  0x7f   :  { %1623 = vmatmul.msk.bf16.gmra.mxu3 %vm373_vm0, %v1503_v19 }
  0x81   :  { %1613 = vmatmul.msk.bf16.gmra.mxu1 %vm373_vm0, %v1503_v19  ;;  %v720_v19 = vld [vmem:[#allocation7 + $0x58] sm:$0xff] }
  0x82   :  { %749 = vmatpush.msrb.mxu3 %v720_v19  ;;  %729 = vmatpush.msrb.mxu1 %v720_v19 }
  0x84   :  { %750 = vmatpush.msrb.mxu3 %v719_v20  ;;  %730 = vmatpush.msrb.mxu1 %v719_v20 }
  0x86   :  { %432 = vmatmul.bf16.gmra.mxu0 %v1491_v22  ;;  %751 = vmatpush.msrb.mxu3 %v718_v37 }
  0x87   :  { %550 = vmatmul.bf16.gmra.mxu2 %v1491_v22  ;;  %731 = vmatpush.msrb.mxu1 %v718_v37 }
  0x8f   :  { %1624 = vmatmul.msk.bf16.gmra.mxu3 %vm373_vm0, %v1511_v25 }
  0x91   :  { %1614 = vmatmul.msk.bf16.gmra.mxu1 %vm373_vm0, %v1511_v25 }
  0x96   :  { %437 = vmatmul.bf16.gmra.mxu0 %v1499_v28 }
  0x97   :  { %555 = vmatmul.bf16.gmra.mxu2 %v1499_v28 }
  0x9f   :  { %1625 = vmatmul.msk.bf16.gmra.mxu3 %vm373_vm0, %v1519_v31 }
  0xa1   :  { %1615 = vmatmul.msk.bf16.gmra.mxu1 %vm373_vm0, %v1519_v31 }
  0xa6   :  { %442 = vmatmul.bf16.gmra.mxu0 %v1507_v34 }
  0xa7   :  { %560 = vmatmul.bf16.gmra.mxu2 %v1507_v34 }
  0xae   :  { %v472_v42 = vpop.f32.mrf.mxu1 }
  0xaf   :  { %1626 = vmatmul.msk.bf16.gmra.mxu3 %vm373_vm0, %v1527_v38 }
  0xb1   :  { %1616 = vmatmul.msk.bf16.gmra.mxu1 %vm373_vm0, %v1527_v38 }
  0xb2   :  { %v590_v43 = vpop.f32.mrf.mxu3 }
  0xb6   :  { %447 = vmatmul.bf16.gmra.mxu0 %v1515_v41  ;;  %v474_v44 = vpop.f32.mrf.mxu1 }
  0xb7   :  { %565 = vmatmul.bf16.gmra.mxu2 %v1515_v41 }
  0xba   :  { %v592_v48 = vpop.f32.mrf.mxu3 }
  0xbe   :  { %v477_v53 = vpop.f32.mrf.mxu1 }
  0xbf   :  { %1627 = vmatmul.msk.bf16.gmra.mxu3 %vm373_vm0, %v1535_v49 }
  0xc1   :  { %1617 = vmatmul.msk.bf16.gmra.mxu1 %vm373_vm0, %v1535_v49 }
  0xc2   :  { %v595_v55 = vpop.f32.mrf.mxu3 }
  0xc3   :  { %v413_v54 = vpop.f32.mrf.mxu0 }
  0xc4   :  { %v473_v56 = vadd.f32 %v472_v42, %v413_v54 }
  0xc6   :  { %452 = vmatmul.bf16.gmra.mxu0 %v1523_v52  ;;  %v479_v58 = vpop.f32.mrf.mxu1 }
  0xc7   :  { %570 = vmatmul.bf16.gmra.mxu2 %v1523_v52  ;;  %v717_v52 = vld [vmem:[#allocation7 + $0x40] sm:$0xff] }
  0xc8   :  { %752 = vmatpush.msrb.mxu3 %v717_v52  ;;  %732 = vmatpush.msrb.mxu1 %v717_v52  ;;  %v1803_v52 = vld [vmem:[#allocation8 + $0x38] sm:$0xff] }
  0xc9   :  { %991 = vmatpush.bf16.msrb.mxu0 %v1803_v52 }
  0xca   :  { %v531_v57 = vpop.f32.mrf.mxu2  ;;  %v597_v62 = vpop.f32.mrf.mxu3 }
  0xcb   :  { %v591_v59 = vadd.f32 %v590_v43, %v531_v57  ;;  %v415_v60 = vpop.f32.mrf.mxu0 }
  0xcc   :  { %v475_v6 = vadd.f32 %v474_v44, %v415_v60 }
  0xcd   :  { %v640_v61 = vmax.f32 %v473_v56, %v591_v59 }
  0xce   :  { %v482_v5 = vpop.f32.mrf.mxu1 }
  0xd2   :  { %v533_v3 = vpop.f32.mrf.mxu2  ;;  %v600_v11 = vpop.f32.mrf.mxu3 }
  0xd3   :  { %v593_v7 = vadd.f32 %v592_v48, %v533_v3  ;;  %v418_v8 = vpop.f32.mrf.mxu0 }
  0xd4   :  { %v478_v9 = vadd.f32 %v477_v53, %v418_v8  ;;  %v716_v53 = vld [vmem:[#allocation7 + $0x38] sm:$0xff] }
  0xd5   :  { %v641_v10 = vmax.f32 %v475_v6, %v593_v7  ;;  %753 = vmatpush.msrb.mxu3 %v716_v53  ;;  %733 = vmatpush.msrb.mxu1 %v716_v53 }
  0xd6   :  { %457 = vmatmul.bf16.gmra.mxu0 %v1531_v4  ;;  %v484_v14 = vpop.f32.mrf.mxu1 }
  0xd7   :  { %v2202_v12 = vmax.f32 %v640_v61, %v641_v10  ;;  %575 = vmatmul.bf16.gmra.mxu2 %v1531_v4  ;;  %754 = vmatpush.msrb.mxu3 %v715_v2 }
  0xd8   :  { %734 = vmatpush.msrb.mxu1 %v715_v2 }
  0xda   :  { %v536_v13 = vpop.f32.mrf.mxu2  ;;  %v602_v18 = vpop.f32.mrf.mxu3 }
  0xdb   :  { %v596_v15 = vadd.f32 %v595_v55, %v536_v13  ;;  %v420_v16 = vpop.f32.mrf.mxu0 }
  0xdc   :  { %v480_v23 = vadd.f32 %v479_v58, %v420_v16 }
  0xdd   :  { %v642_v17 = vmax.f32 %v478_v9, %v596_v15 }
  0xde   :  { %v487_v22 = vpop.f32.mrf.mxu1 }
  0xe2   :  { %v538_v21 = vpop.f32.mrf.mxu2  ;;  %v605_v28 = vpop.f32.mrf.mxu3 }
  0xe3   :  { %v598_v24 = vadd.f32 %v597_v62, %v538_v21  ;;  %v423_v25 = vpop.f32.mrf.mxu0  ;;  %v713_v21 = vld [vmem:[#allocation7 + $0x20] sm:$0xff] }
  0xe4   :  { %v483_v26 = vadd.f32 %v482_v5, %v423_v25 }
  0xe5   :  { %v643_v27 = vmax.f32 %v480_v23, %v598_v24 }
  0xe6   :  { %v489_v31 = vpop.f32.mrf.mxu1 }
  0xe7   :  { %v2204_v29 = vmax.f32 %v642_v17, %v643_v27 }
  0xea   :  { %v541_v30 = vpop.f32.mrf.mxu2  ;;  %v607_v36 = vpop.f32.mrf.mxu3 }
  0xeb   :  { %v601_v32 = vadd.f32 %v600_v11, %v541_v30  ;;  %v425_v33 = vpop.f32.mrf.mxu0  ;;  %v711_v30 = vld [vmem:[#allocation7 + $0x10] sm:$0xff] }
  0xec   :  { %v485_v34 = vadd.f32 %v484_v14, %v425_v33 }
  0xed   :  { %v644_v35 = vmax.f32 %v483_v26, %v601_v32  ;;  %v712_v26 = vld [vmem:[#allocation7 + $0x18] sm:$0xff] }
  0xee   :  { %v492_v41 = vpop.f32.mrf.mxu1 }
  0xf2   :  { %v543_v38 = vpop.f32.mrf.mxu2  ;;  %v610_v44 = vpop.f32.mrf.mxu3 }
  0xf3   :  { %v603_v39 = vadd.f32 %v602_v18, %v543_v38  ;;  %v428_v40 = vpop.f32.mrf.mxu0  ;;  %v714_v18 = vld [vmem:[#allocation7 + $0x28] sm:$0xff] }
  0xf4   :  { %v488_v42 = vadd.f32 %v487_v22, %v428_v40  ;;  %755 = vmatpush.msrb.mxu3 %v714_v18  ;;  %735 = vmatpush.msrb.mxu1 %v714_v18 }
  0xf5   :  { %v645_v43 = vmax.f32 %v485_v34, %v603_v39  ;;  %v710_v39 = vld [vmem:[#allocation7 + $0x8] sm:$0xff] }
  0xf6   :  { %v494_v51 = vpop.f32.mrf.mxu1  ;;  %756 = vmatpush.msrb.mxu3 %v713_v21  ;;  %736 = vmatpush.msrb.mxu1 %v713_v21 }
  0xf7   :  { %v2206_v45 = vmax.f32 %v644_v35, %v645_v43 }
  0xf8   :  { %757 = vmatpush.msrb.mxu3 %v712_v26  ;;  %737 = vmatpush.msrb.mxu1 %v712_v26  ;;  %v1800_v26 = vld [vmem:[#allocation8 + $0x20] sm:$0xff] }
  0xfa   :  { %v546_v46 = vpop.f32.mrf.mxu2  ;;  %v612_v54 = vpop.f32.mrf.mxu3  ;;  %758 = vmatpush.msrb.mxu3 %v711_v30  ;;  %738 = vmatpush.msrb.mxu1 %v711_v30 }
  0xfb   :  { %v606_v47 = vadd.f32 %v605_v28, %v546_v46  ;;  %v430_v48 = vpop.f32.mrf.mxu0 }
  0xfc   :  { %v490_v49 = vadd.f32 %v489_v31, %v430_v48  ;;  %759 = vmatpush.msrb.mxu3 %v710_v39  ;;  %739 = vmatpush.msrb.mxu1 %v710_v39  ;;  %v2220_v48 = vld [vmem:[#allocation14] sm:$0xff] }
  0xfd   :  { %v646_v50 = vmax.f32 %v488_v42, %v606_v47  ;;  %v2223_v53 = vperm.slane %v2220_v48, 0 }
  0xfe   :  { %v497_v61 = vpop.f32.mrf.mxu1 }
 0x102   :  { %v548_v55 = vpop.f32.mrf.mxu2  ;;  %v615_v62 = vpop.f32.mrf.mxu3 }
 0x103   :  { %v608_v56 = vadd.f32 %v607_v36, %v548_v55  ;;  %v433_v57 = vpop.f32.mrf.mxu0  ;;  %v1810_v55 = vld [vmem:[#allocation8 + $0x70] sm:$0xff] }
 0x104   :  { %v493_v58 = vadd.f32 %v492_v41, %v433_v57  ;;  %v2227_v57 = vadd.f32 %v2223_v53, %v2204_v29 }
 0x105   :  { %v647_v59 = vmax.f32 %v490_v49, %v608_v56  ;;  %v1802_v56 = vld [vmem:[#allocation8 + $0x30] sm:$0xff] }
 0x106   :  { %v2210_v5 = vpop.f32.mrf.mxu1  ;;  %992 = vmatpush.bf16.msrb.mxu0 %v1802_v56  ;;  %v691_v29 = vmul.f32 %v2227_v57, %v2227_v57  ;;  %v1798_v56 = vld [vmem:[#allocation8 + $0x10] sm:$0xff] }
 0x107   :  { %v2208_v60 = vmax.f32 %v646_v50, %v647_v59 }
 0x109   :  { %v2242_v18 = vadd.f32 %v2223_v53, %v2208_v60 }
 0x10a   :  { %v551_v63 = vpop.f32.mrf.mxu2  ;;  %v617_v7 = vpop.f32.mrf.mxu3 }
 0x10b   :  { %v611_v0 = vadd.f32 %v610_v44, %v551_v63  ;;  %v435_v1 = vpop.f32.mrf.mxu0  ;;  %v709_v44 = vld [vmem:[#allocation7] sm:$0xff] }
 0x10c   :  { %v495_v3 = vadd.f32 %v494_v51, %v435_v1  ;;  %760 = vmatpush.msrb.mxu3 %v709_v44  ;;  %740 = vmatpush.msrb.mxu1 %v709_v44  ;;  %v1811_v51 = vld [vmem:[#allocation8 + $0x78] sm:$0xff] }
 0x10d   :  { %v648_v4 = vmax.f32 %v493_v58, %v611_v0  ;;  %1020 = vmatpush.bf16.msrb.mxu2 %v1811_v51 }
 0x10e   :  { %v502_v17 = vpop.f32.mrf.mxu1 }
 0x111   :  { %1021 = vmatpush.bf16.msrb.mxu2 %v1810_v55  ;;  %v1806_v55 = vld [vmem:[#allocation8 + $0x50] sm:$0xff] }
 0x112   :  { %v553_v6 = vpop.f32.mrf.mxu2  ;;  %v620_v19 = vpop.f32.mrf.mxu3 }
 0x113   :  { %v613_v8 = vadd.f32 %v612_v54, %v553_v6  ;;  %v438_v9 = vpop.f32.mrf.mxu0  ;;  %v2232_v6 = vadd.f32 %v2223_v53, %v2202_v12 }
 0x114   :  { %v2212_v10 = vadd.f32 %v497_v61, %v438_v9 }
 0x115   :  { %v649_v11 = vmax.f32 %v495_v3, %v613_v8  ;;  %v1809_v3 = vld [vmem:[#allocation8 + $0x68] sm:$0xff]  ;;  %v681_v60 = vadd.f32 %v2227_v57, %v2232_v6 }
 0x116   :  { %v504_v24 = vpop.f32.mrf.mxu1  ;;  %1022 = vmatpush.bf16.msrb.mxu2 %v1809_v3 }
 0x117   :  { %v2214_v13 = vmax.f32 %v648_v4, %v649_v11  ;;  %v1801_v4 = vld [vmem:[#allocation8 + $0x28] sm:$0xff] }
 0x118   :  { %993 = vmatpush.bf16.msrb.mxu0 %v1801_v4 }
 0x11a   :  { %v556_v14 = vpop.f32.mrf.mxu2  ;;  %v622_v25 = vpop.f32.mrf.mxu3 }
 0x11b   :  { %v2216_v15 = vadd.f32 %v615_v62, %v556_v14  ;;  %v440_v16 = vpop.f32.mrf.mxu0 }
 0x11c   :  { %v500_v58 = vadd.f32 %v2210_v5, %v440_v16  ;;  %v2238_v5 = vadd.f32 %v2223_v53, %v2206_v45  ;;  %994 = vmatpush.bf16.msrb.mxu0 %v1800_v26 }
 0x11d   :  { %v650_v20 = vmax.f32 %v2212_v10, %v2216_v15  ;;  %v2255_v15 = vadd.f32 %v2223_v53, %v2214_v13  ;;  %v1799_v13 = vld [vmem:[#allocation8 + $0x18] sm:$0xff] }
 0x11e   :  { %v507_v31 = vpop.f32.mrf.mxu1  ;;  %v692_v10 = vmul.f32 %v2238_v5, %v2238_v5 }
 0x120   :  { %995 = vmatpush.bf16.msrb.mxu0 %v1799_v13 }
 0x122   :  { %v558_v22 = vpop.f32.mrf.mxu2  ;;  %v625_v32 = vpop.f32.mrf.mxu3 }
 0x123   :  { %v443_v23 = vpop.f32.mrf.mxu0  ;;  %v618_v54 = vadd.f32 %v617_v7, %v558_v22 }
 0x124   :  { %v503_v63 = vadd.f32 %v502_v17, %v443_v23  ;;  %996 = vmatpush.bf16.msrb.mxu0 %v1798_v56 }
 0x125   :  { %v651_v62 = vmax.f32 %v500_v58, %v618_v54 }
 0x126   :  { %v509_v35 = vpop.f32.mrf.mxu1 }
 0x127   :  { %v665_v12 = vmax.f32 %v650_v20, %v651_v62 }
 0x12a   :  { %v561_v27 = vpop.f32.mrf.mxu2  ;;  %v627_v37 = vpop.f32.mrf.mxu3 }
 0x12b   :  { %v445_v28 = vpop.f32.mrf.mxu0  ;;  %v621_v0 = vadd.f32 %v620_v19, %v561_v27  ;;  %v690_v27 = vmul.f32 %v2232_v6, %v2232_v6 }
 0x12c   :  { %v505_v1 = vadd.f32 %v504_v24, %v445_v28 }
 0x12d   :  { %v652_v19 = vmax.f32 %v503_v63, %v621_v0 }
 0x12e   :  { %v512_v41 = vpop.f32.mrf.mxu1 }
 0x132   :  { %v563_v33 = vpop.f32.mrf.mxu2  ;;  %v630_v43 = vpop.f32.mrf.mxu3 }
 0x133   :  { %v448_v34 = vpop.f32.mrf.mxu0  ;;  %v623_v61 = vadd.f32 %v622_v25, %v563_v33  ;;  %v1808_v25 = vld [vmem:[#allocation8 + $0x60] sm:$0xff]  ;;  %v682_v33 = vadd.f32 %v681_v60, %v2238_v5 }
 0x134   :  { %v508_v7 = vadd.f32 %v507_v31, %v448_v34  ;;  %v693_v34 = vmul.f32 %v2242_v18, %v2242_v18  ;;  %1023 = vmatpush.bf16.msrb.mxu2 %v1808_v25 }
 0x135   :  { %v653_v9 = vmax.f32 %v505_v1, %v623_v61 }
 0x136   :  { %v514_v49 = vpop.f32.mrf.mxu1 }
 0x137   :  { %v666_v28 = vmax.f32 %v652_v19, %v653_v9 }
 0x13a   :  { %v566_v36 = vpop.f32.mrf.mxu2  ;;  %v632_v50 = vpop.f32.mrf.mxu3 }
 0x13b   :  { %v450_v38 = vpop.f32.mrf.mxu0  ;;  %v626_v11 = vadd.f32 %v625_v32, %v566_v36  ;;  %v700_v32 = vadd.f32 %v691_v29, %v690_v27 }
 0x13c   :  { %v510_v14 = vadd.f32 %v509_v35, %v450_v38  ;;  %v2261_v35 = vadd.f32 %v2223_v53, %v665_v12  ;;  %v1807_v38 = vld [vmem:[#allocation8 + $0x58] sm:$0xff] }
 0x13d   :  { %v654_v30 = vmax.f32 %v508_v7, %v626_v11  ;;  %v701_v39 = vadd.f32 %v700_v32, %v692_v10  ;;  %1024 = vmatpush.bf16.msrb.mxu2 %v1807_v38  ;;  %v1804_v32 = vld [vmem:[#allocation8 + $0x40] sm:$0xff] }
 0x13e   :  { %v517_v16 = vpop.f32.mrf.mxu1 }
 0x13f   :  { %v702_v44 = vadd.f32 %v701_v39, %v693_v34 }
 0x141   :  { %1025 = vmatpush.bf16.msrb.mxu2 %v1806_v55 }
 0x142   :  { %v568_v40 = vpop.f32.mrf.mxu2  ;;  %v635_v22 = vpop.f32.mrf.mxu3 }
 0x143   :  { %v453_v42 = vpop.f32.mrf.mxu0  ;;  %v628_v2 = vadd.f32 %v627_v37, %v568_v40  ;;  %v683_v40 = vadd.f32 %v682_v33, %v2242_v18  ;;  %v1796_v33 = vld [vmem:[#allocation8] sm:$0xff] }
 0x144   :  { %v513_v21 = vadd.f32 %v512_v41, %v453_v42  ;;  %v694_v41 = vmul.f32 %v2255_v15, %v2255_v15  ;;  %v2267_v42 = vadd.f32 %v2223_v53, %v666_v28 }
 0x145   :  { %v655_v45 = vmax.f32 %v510_v14, %v628_v2 }
 0x146   :  { %v519_v52 = vpop.f32.mrf.mxu1  ;;  %v703_v58 = vadd.f32 %v702_v44, %v694_v41  ;;  %v696_v63 = vmul.f32 %v2267_v42, %v2267_v42 }
 0x147   :  { %v667_v36 = vmax.f32 %v654_v30, %v655_v45  ;;  %v1797_v30 = vld [vmem:[#allocation8 + $0x8] sm:$0xff] }
 0x148   :  { %997 = vmatpush.bf16.msrb.mxu0 %v1797_v30 }
 0x14a   :  { %v571_v46 = vpop.f32.mrf.mxu2  ;;  %v637_v61 = vpop.f32.mrf.mxu3 }
 0x14b   :  { %v455_v47 = vpop.f32.mrf.mxu0  ;;  %v631_v23 = vadd.f32 %v630_v43, %v571_v46  ;;  %v684_v46 = vadd.f32 %v683_v40, %v2255_v15 }
 0x14c   :  { %v515_v24 = vadd.f32 %v514_v49, %v455_v47  ;;  %v695_v47 = vmul.f32 %v2261_v35, %v2261_v35  ;;  %998 = vmatpush.bf16.msrb.mxu0 %v1796_v33 }
 0x14d   :  { %v656_v37 = vmax.f32 %v513_v21, %v631_v23 }
 0x14e   :  { %v704_v4 = vadd.f32 %v703_v58, %v695_v47  ;;  %v788_v47 = vperm.slane %v2220_v48, 1 }
 0x152   :  { %v573_v59 = vpop.f32.mrf.mxu2 }
 0x153   :  { %v458_v8 = vpop.f32.mrf.mxu0  ;;  %v633_v17 = vadd.f32 %v632_v50, %v573_v59  ;;  %v2273_v50 = vadd.f32 %v2223_v53, %v667_v36  ;;  %v685_v59 = vadd.f32 %v684_v46, %v2261_v35 }
 0x154   :  { %v518_v51 = vadd.f32 %v517_v16, %v458_v8  ;;  %v705_v16 = vadd.f32 %v704_v4, %v696_v63 }
 0x155   :  { %v657_v31 = vmax.f32 %v515_v24, %v633_v17  ;;  %v686_v3 = vadd.f32 %v685_v59, %v2267_v42  ;;  %v697_v8 = vmul.f32 %v2273_v50, %v2273_v50  ;;  %v2091_v24 = vmov 320.0  }
 0x156   :  { %1843 = vrcp.f32 %v2091_v24 }
 0x157   :  { %v668_v43 = vmax.f32 %v656_v37, %v657_v31  ;;  %v687_v11 = vadd.f32 %v686_v3, %v2273_v50  ;;  %v706_v19 = vadd.f32 %v705_v16, %v697_v8 }
 0x159   :  { %v2279_v0 = vadd.f32 %v2223_v53, %v668_v43 }
 0x15a   :  { %v576_v20 = vpop.f32.mrf.mxu2 }
 0x15b   :  { %v460_v49 = vpop.f32.mrf.mxu0  ;;  %v636_v54 = vadd.f32 %v635_v22, %v576_v20  ;;  %v698_v14 = vmul.f32 %v2279_v0, %v2279_v0  ;;  %v688_v12 = vadd.f32 %v687_v11, %v2279_v0 }
 0x15c   :  { %v520_v1 = vadd.f32 %v519_v52, %v460_v49  ;;  %v1844_v25 = vpop.eup %1843 }
 0x15d   :  { %v658_v29 = vmax.f32 %v518_v51, %v636_v54  ;;  %v707_v45 = vadd.f32 %v706_v19, %v698_v14  ;;  %v766_v26 = vmul.f32 320.0, %v1844_v25  ;;  %vm770_vm1 = vweird.f32 %v1844_v25 }
 0x15e   :  { %v791_v54 = vperm.slane %v2220_v48, 2 }
 0x15f   :  { %v767_v27 = vsub.f32 1.0, %v766_v26 }
 0x161   :  { %v768_v60 = vmul.f32 %v1844_v25, %v767_v27 }
 0x162   :  { %v578_v62 = vpop.f32.mrf.mxu2 }
 0x163   :  { %v638_v2 = vadd.f32 %v637_v61, %v578_v62  ;;  %v769_v10 = vadd.f32 %v1844_v25, %v768_v60 }
 0x165   :  { %v659_v7 = vmax.f32 %v520_v1, %v638_v2  ;;  %v771_v28 = vsel %vm770_vm1, %v1844_v25, %v769_v10 }
 0x167   :  { %v669_v9 = vmax.f32 %v658_v29, %v659_v7 }
 0x169   :  { %v680_v17 = vadd.f32 %v2223_v53, %v669_v9  ;;  %v1805_v53 = vld [vmem:[#allocation8 + $0x48] sm:$0xff] }
 0x16a   :  { %1026 = vmatpush.bf16.msrb.mxu2 %v1805_v53 }
 0x16b   :  { %v689_v21 = vadd.f32 %v688_v12, %v680_v17  ;;  %v699_v22 = vmul.f32 %v680_v17, %v680_v17 }
 0x16d   :  { %741 = vmatmul.f32.vlgmr.msrb.gmra.mxu1 %v689_v21  ;;  %v708_v23 = vadd.f32 %v707_v45, %v699_v22 }
 0x16e   :  { %1027 = vmatpush.bf16.msrb.mxu2 %v1804_v32 }
 0x16f   :  { %761 = vmatmul.f32.vlgmr.msrb.gmra.mxu3 %v708_v23 }
 0x1ea   :  { %v742_v20 = vpop.f32.mrf.mxu1 }
 0x1eb   :  { %v772_v31 = vmul.f32 %v771_v28, %v742_v20 }
 0x1ed   :  { %v774_v36 = vmul.f32 %v772_v31, %v772_v31 }
 0x1f2   :  { %v762_v34 = vpop.f32.mrf.mxu3 }
 0x1f3   :  { %v773_v37 = vmul.f32 %v771_v28, %v762_v34 }
 0x1f5   :  { %v775_v38 = vsub.f32 %v773_v37, %v774_v36 }
 0x1f7   :  { %v776_v13 = vmax.f32 %v775_v38, 0.0 }
 0x1f9   :  { %v777_v39 = vadd.f32 1e-05, %v776_v13 }
 0x1fb   :  { %1845 = vrsqrt.f32 %v777_v39  ;;  %vm784_vm3 = vweird.f32 %v777_v39 }
 0x201   :  { %v1846_v40 = vpop.eup %1845 }
 0x202   :  { %v779_v41 = vmul.f32 %v1846_v40, %v777_v39  ;;  %vm785_vm2 = vweird.f32 %v1846_v40 }
 0x203   :  { %vm786_vm4 = vmor %vm784_vm3, %vm785_vm2 }
 0x204   :  { %v780_v43 = vmul.f32 %v1846_v40, %v779_v41 }
 0x206   :  { %v781_v44 = vmul.f32 0.5, %v780_v43 }
 0x208   :  { %v782_v46 = vsub.f32 1.5, %v781_v44 }
 0x20a   :  { %v783_v49 = vmul.f32 %v1846_v40, %v782_v46 }
 0x20c   :  { %v787_v51 = vsel %vm786_vm4, %v1846_v40, %v783_v49 }
 0x20d   :  { %v789_v52 = vmul.f32 %v788_v47, %v787_v51 }
 0x20f   :  { %v790_v55 = vmul.f32 %v789_v52, %v772_v31  ;;  %v793_v58 = vmul.f32 %v789_v52, %v2232_v6  ;;  %v794_v59 = vmul.f32 %v789_v52, %v2227_v57  ;;  %v795_v61 = vmul.f32 %v789_v52, %v2238_v5 }
 0x210   :  { %v796_v9 = vmul.f32 %v789_v52, %v2242_v18  ;;  %v797_v6 = vmul.f32 %v789_v52, %v2255_v15  ;;  %v798_v25 = vmul.f32 %v789_v52, %v2261_v35  ;;  %v799_v18 = vmul.f32 %v789_v52, %v2267_v42 }
 0x211   :  { %v792_v56 = vsub.f32 %v791_v54, %v790_v55  ;;  %v800_v32 = vmul.f32 %v789_v52, %v2273_v50  ;;  %v801_v33 = vmul.f32 %v789_v52, %v2279_v0 }
 0x213   :  { %v802_v62 = vadd.f32 %v793_v58, %v792_v56  ;;  %v803_v63 = vadd.f32 %v794_v59, %v792_v56  ;;  %v804_v1 = vadd.f32 %v795_v61, %v792_v56  ;;  %v805_v12 = vadd.f32 %v796_v9, %v792_v56 }
 0x214   :  { %v806_v5 = vadd.f32 %v797_v6, %v792_v56  ;;  %v807_v60 = vadd.f32 %v798_v25, %v792_v56  ;;  %v808_v15 = vadd.f32 %v799_v18, %v792_v56  ;;  %v809_v36 = vadd.f32 %v800_v32, %v792_v56  ;;  %v1130_v6 = vld [vmem:[#allocation10 + $0x28] sm:$0xff]  ;;  %v1125_v25 = vld [vmem:[#allocation10] sm:$0xff] }
 0x215   :  { %v811_v2 = vmax.f32 %v802_v62, 0.0  ;;  %v812_v3 = vmax.f32 %v803_v63, 0.0  ;;  %v813_v4 = vmax.f32 %v804_v1, 0.0  ;;  %v814_v19 = vmax.f32 %v805_v12, 0.0 }
 0x216   :  { %v815_v21 = vmax.f32 %v806_v5, 0.0  ;;  %v816_v10 = vmax.f32 %v807_v60, 0.0  ;;  %v817_v20 = vmax.f32 %v808_v15, 0.0  ;;  %v810_v42 = vadd.f32 %v801_v33, %v792_v56  ;;  %v1129_v5 = vld [vmem:[#allocation10 + $0x20] sm:$0xff] }
 0x217   :  { %v820_v29 = vpack.c.bf16 %v811_v2, %v811_v2  ;;  %v821_v7 = vpack.c.bf16 %v812_v3, %v812_v3  ;;  %v822_v8 = vpack.c.bf16 %v813_v4, %v813_v4  ;;  %v823_v22 = vpack.c.bf16 %v814_v19, %v814_v19  ;;  %v1128_v19 = vld [vmem:[#allocation10 + $0x18] sm:$0xff] }
 0x218   :  { %v824_v45 = vpack.c.bf16 %v815_v21, %v815_v21  ;;  %v825_v28 = vpack.c.bf16 %v816_v10, %v816_v10  ;;  %v826_v53 = vpack.c.bf16 %v817_v20, %v817_v20  ;;  %v818_v37 = vmax.f32 %v809_v36, 0.0  ;;  %v1127_v21 = vld [vmem:[#allocation10 + $0x10] sm:$0xff] }
 0x219   :  { %v837_v11 = vunpack.c.l.b16 %v820_v29  ;;  %v838_v14 = vunpack.c.l.b16 %v821_v7  ;;  %v839_v16 = vunpack.c.l.b16 %v822_v8  ;;  %v840_v23 = vunpack.c.l.b16 %v823_v22 }
 0x21a   :  { %v841_v24 = vunpack.c.l.b16 %v824_v45  ;;  %v842_v30 = vunpack.c.l.b16 %v825_v28  ;;  %v843_v31 = vunpack.c.l.b16 %v826_v53  ;;  %v819_v38 = vmax.f32 %v810_v42, 0.0  ;;  %v1126_v45 = vld [vmem:[#allocation10 + $0x8] sm:$0xff] }
 0x21b   :  { %v845_v17 = vpack.c.b16 %v838_v14, %v837_v11  ;;  %v855_v57 = vpack.c.b16 %v839_v16, %v838_v14  ;;  %v846_v26 = vpack.c.b16 %v840_v23, %v839_v16  ;;  %v827_v13 = vpack.c.bf16 %v818_v37, %v818_v37  ;;  %v1132_v14 = vld [vmem:[#allocation10 + $0x38] sm:$0xff]  ;;  %v1131_v16 = vld [vmem:[#allocation10 + $0x30] sm:$0xff] }
 0x21c   :  { %v856_v27 = vpack.c.b16 %v841_v24, %v840_v23  ;;  %v847_v34 = vpack.c.b16 %v842_v30, %v841_v24  ;;  %v857_v35 = vpack.c.b16 %v843_v31, %v842_v30  ;;  %v828_v39 = vpack.c.bf16 %v819_v38, %v819_v38  ;;  %1144 = vmatpush.msra.mxu1 %v1132_v14 }
 0x21d   :  { %999 = vmatmul.bf16.vlgmr.msrb.gmra.mxu0 %v845_v17  ;;  %1028 = vmatmul.bf16.vlgmr.msrb.gmra.mxu2 %v855_v57  ;;  %v844_v40 = vunpack.c.l.b16 %v827_v13  ;;  %v1102_v32 = vperm.slane %v2220_v48, 5 }
 0x21e   :  { %v854_v41 = vunpack.c.l.b16 %v828_v39  ;;  %1167 = vmatpush.msra.mxu3 %v1132_v14  ;;  %1145 = vmatpush.msra.mxu1 %v1131_v16 }
 0x21f   :  { %v848_v43 = vpack.c.b16 %v844_v40, %v843_v31 }
 0x220   :  { %v858_v44 = vpack.c.b16 %v854_v41, %v844_v40  ;;  %1168 = vmatpush.msra.mxu3 %v1131_v16  ;;  %1146 = vmatpush.msra.mxu1 %v1130_v6 }
 0x222   :  { %1169 = vmatpush.msra.mxu3 %v1130_v6  ;;  %1147 = vmatpush.msra.mxu1 %v1129_v5 }
 0x224   :  { %1170 = vmatpush.msra.mxu3 %v1129_v5  ;;  %1148 = vmatpush.msra.mxu1 %v1128_v19 }
 0x226   :  { %1171 = vmatpush.msra.mxu3 %v1128_v19  ;;  %1149 = vmatpush.msra.mxu1 %v1127_v21 }
 0x228   :  { %1172 = vmatpush.msra.mxu3 %v1127_v21  ;;  %1150 = vmatpush.msra.mxu1 %v1126_v45 }
 0x22a   :  { %1173 = vmatpush.msra.mxu3 %v1126_v45  ;;  %1151 = vmatpush.msra.mxu1 %v1125_v25 }
 0x22c   :  { %1174 = vmatpush.msra.mxu3 %v1125_v25  ;;  %v1819_v25 = vld [vmem:[#allocation11 + $0x38] sm:$0xff] }
 0x22d   :  { %1004 = vmatmul.bf16.gmra.mxu0 %v846_v26  ;;  %1033 = vmatmul.bf16.gmra.mxu2 %v856_v27 }
 0x22e   :  { %1370 = vmatpush.bf16.msrb.mxu1 %v1819_v25  ;;  %v1399_v25 = vld [vmem:[#allocation13 + $0x10] sm:$0xff] }
 0x23d   :  { %1009 = vmatmul.bf16.gmra.mxu0 %v847_v34  ;;  %1038 = vmatmul.bf16.gmra.mxu2 %v857_v35 }
 0x24d   :  { %1014 = vmatmul.bf16.gmra.mxu0 %v848_v43  ;;  %1043 = vmatmul.bf16.gmra.mxu2 %v858_v44 }
 0x29a   :  { %v1000_v46 = vpop.f32.mrf.mxu0 }
 0x2a0   :  { %v1029_v50 = vpop.f32.mrf.mxu2 }
 0x2a1   :  { %v2300_v47 = vadd.f32 %v1029_v50, %v1000_v46 }
 0x2a2   :  { %v1002_v0 = vpop.f32.mrf.mxu0 }
 0x2a3   :  { %1057 = vrot.lane.b32.xlu0 %v2300_v47, %s2083_s17 }
 0x2a8   :  { %v1031_v49 = vpop.f32.mrf.mxu2 }
 0x2a9   :  { %v2304_v51 = vadd.f32 %v1031_v49, %v1002_v0 }
 0x2aa   :  { %v1005_v52 = vpop.f32.mrf.mxu0 }
 0x2ab   :  { %1059 = vrot.lane.b32.xlu0 %v2304_v51, %s2083_s17 }
 0x2b0   :  { %v1034_v54 = vpop.f32.mrf.mxu2 }
 0x2b1   :  { %v1035_v55 = vadd.f32 %v1034_v54, %v1005_v52 }
 0x2b2   :  { %v1007_v56 = vpop.f32.mrf.mxu0 }
 0x2b3   :  { %1061 = vrot.lane.b32.xlu1 %v1035_v55, %s2083_s17 }
 0x2b8   :  { %v1036_v58 = vpop.f32.mrf.mxu2 }
 0x2b9   :  { %v1037_v59 = vadd.f32 %v1036_v58, %v1007_v56 }
 0x2ba   :  { %v1010_v61 = vpop.f32.mrf.mxu0 }
 0x2bb   :  { %1063 = vrot.lane.b32.xlu1 %v1037_v59, %s2083_s17 }
 0x2c0   :  { %v1039_v62 = vpop.f32.mrf.mxu2 }
 0x2c1   :  { %v1040_v63 = vadd.f32 %v1039_v62, %v1010_v61 }
 0x2c2   :  { %v1012_v1 = vpop.f32.mrf.mxu0 }
 0x2c3   :  { %1065 = vrot.lane.b32.xlu2 %v1040_v63, %s2083_s17 }
 0x2c8   :  { %v1041_v2 = vpop.f32.mrf.mxu2 }
 0x2c9   :  { %v1042_v3 = vadd.f32 %v1041_v2, %v1012_v1 }
 0x2ca   :  { %v1015_v4 = vpop.f32.mrf.mxu0 }
 0x2cb   :  { %1067 = vrot.lane.b32.xlu2 %v1042_v3, %s2083_s17 }
 0x2d0   :  { %v1044_v29 = vpop.f32.mrf.mxu2 }
 0x2d1   :  { %v2312_v7 = vadd.f32 %v1044_v29, %v1015_v4 }
 0x2d2   :  { %v1017_v8 = vpop.f32.mrf.mxu0 }
 0x2d3   :  { %1069 = vrot.lane.b32.xlu0 %v2312_v7, %s2083_s17 }
 0x2d8   :  { %v1046_v9 = vpop.f32.mrf.mxu2 }
 0x2d9   :  { %v2316_v11 = vadd.f32 %v1046_v9, %v1017_v8 }
 0x2db   :  { %1071 = vrot.lane.b32.xlu1 %v2316_v11, %s2083_s17 }
 0x315   :  { %v1058_v57 = vpop.permute.xlu0 %1057 }
 0x316   :  { %v1081_v60 = vmax.f32 %v2300_v47, %v1058_v57 }
 0x318   :  { %v1090_v30 = vsel %vm1089_vm5, %v1081_v60, -inf  ;;  %v1825_v60 = vld [vmem:[#allocation11 + $0x68] sm:$0xff] }
 0x31d   :  { %v1066_v12 = vpop.permute.xlu2 %1065  ;;  %v1060_v23 = vpop.permute.xlu0 %1059 }
 0x31e   :  { %v1082_v18 = vmax.f32 %v2304_v51, %v1060_v23  ;;  %v1085_v31 = vmax.f32 %v1040_v63, %v1066_v12  ;;  %v1827_v23 = vld [vmem:[#allocation11 + $0x78] sm:$0xff] }
 0x31f   :  { %1383 = vmatpush.bf16.msrb.mxu3 %v1827_v23  ;;  %v1401_v23 = vld [vmem:[#allocation13 + $0x20] sm:$0xff] }
 0x320   :  { %v1091_v10 = vsel %vm1089_vm5, %v1082_v18, -inf  ;;  %v1096_v36 = vsel %vm1089_vm5, %v1085_v31, -inf  ;;  %v1823_v31 = vld [vmem:[#allocation11 + $0x58] sm:$0xff] }
 0x321   :  { %v1092_v33 = vmax.f32 %v1090_v30, %v1091_v10 }
 0x323   :  { %v2331_v42 = vadd.f32 %v1102_v32, %v1092_v33 }
 0x325   :  { %v1062_v17 = vpop.permute.xlu1 %1061  ;;  %v1068_v27 = vpop.permute.xlu2 %1067  ;;  %v1114_v40 = vmul.f32 %v2331_v42, %v2331_v42  ;;  %v1107_v50 = vsel %vm1089_vm5, %v2331_v42, 0.0 }
 0x326   :  { %v1083_v26 = vmax.f32 %v1035_v55, %v1062_v17  ;;  %v1086_v28 = vmax.f32 %v1042_v3, %v1068_v27 }
 0x327   :  { %v1118_v52 = vsel %vm1089_vm5, %v1114_v40, 0.0 }
 0x328   :  { %v1093_v20 = vsel %vm1089_vm5, %v1083_v26, -inf  ;;  %v1097_v34 = vsel %vm1089_vm5, %v1086_v28, -inf  ;;  %v1818_v26 = vld [vmem:[#allocation11 + $0x30] sm:$0xff] }
 0x329   :  { %v1098_v37 = vmax.f32 %v1096_v36, %v1097_v34  ;;  %1371 = vmatpush.bf16.msrb.mxu1 %v1818_v26  ;;  %v1205_v34 = vperm.slane %v2220_v48, 7  ;;  %v1397_v26 = vld [vmem:[#allocation13] sm:$0xff] }
 0x32b   :  { %v2338_v41 = vadd.f32 %v1102_v32, %v1098_v37  ;;  %v1822_v37 = vld [vmem:[#allocation11 + $0x50] sm:$0xff] }
 0x32d   :  { %v1064_v22 = vpop.permute.xlu1 %1063  ;;  %v1116_v54 = vmul.f32 %v2338_v41, %v2338_v41  ;;  %v1110_v58 = vsel %vm1089_vm5, %v2338_v41, 0.0 }
 0x32e   :  { %v1084_v24 = vmax.f32 %v1037_v59, %v1064_v22 }
 0x32f   :  { %v1121_v62 = vsel %vm1089_vm5, %v1116_v54, 0.0 }
 0x330   :  { %v1094_v15 = vsel %vm1089_vm5, %v1084_v24, -inf  ;;  %v1826_v24 = vld [vmem:[#allocation11 + $0x70] sm:$0xff] }
 0x331   :  { %v1095_v53 = vmax.f32 %v1093_v20, %v1094_v15  ;;  %1384 = vmatpush.bf16.msrb.mxu3 %v1826_v24  ;;  %v1824_v20 = vld [vmem:[#allocation11 + $0x60] sm:$0xff]  ;;  %v1400_v24 = vld [vmem:[#allocation13 + $0x18] sm:$0xff] }
 0x333   :  { %v2328_v35 = vadd.f32 %v1102_v32, %v1095_v53  ;;  %v1202_v53 = vperm.slane %v2220_v48, 6 }
 0x335   :  { %v1115_v13 = vmul.f32 %v2328_v35, %v2328_v35  ;;  %v1108_v43 = vsel %vm1089_vm5, %v2328_v35, 0.0  ;;  %1385 = vmatpush.bf16.msrb.mxu3 %v1825_v60 }
 0x336   :  { %v1109_v0 = vadd.f32 %v1108_v43, %v1107_v50  ;;  %v1821_v50 = vld [vmem:[#allocation11 + $0x48] sm:$0xff] }
 0x337   :  { %v1119_v47 = vsel %vm1089_vm5, %v1115_v13, 0.0 }
 0x338   :  { %v1120_v56 = vadd.f32 %v1119_v47, %v1118_v52  ;;  %v1111_v61 = vadd.f32 %v1110_v58, %v1109_v0 }
 0x339   :  { %1386 = vmatpush.bf16.msrb.mxu3 %v1824_v20 }
 0x33a   :  { %v1122_v3 = vadd.f32 %v1121_v62, %v1120_v56  ;;  %v1814_v62 = vld [vmem:[#allocation11 + $0x10] sm:$0xff] }
 0x33d   :  { %1387 = vmatpush.bf16.msrb.mxu3 %v1823_v31  ;;  %v1413_v31 = vperm.slane %v2220_v48, 4 }
 0x341   :  { %1388 = vmatpush.bf16.msrb.mxu3 %v1822_v37 }
 0x345   :  { %v1070_v38 = vpop.permute.xlu0 %1069  ;;  %1389 = vmatpush.bf16.msrb.mxu3 %v1821_v50 }
 0x346   :  { %v1087_v39 = vmax.f32 %v2312_v7, %v1070_v38  ;;  %v2092_v7 = vmov 8.0  }
 0x347   :  { %1847 = vrcp.f32 %v2092_v7 }
 0x348   :  { %v1099_v49 = vsel %vm1089_vm5, %v1087_v39, -inf }
 0x34d   :  { %v1072_v44 = vpop.permute.xlu1 %1071  ;;  %v1848_v8 = vpop.eup %1847 }
 0x34e   :  { %v1088_v46 = vmax.f32 %v2316_v11, %v1072_v44  ;;  %v1180_v9 = vmul.f32 8.0, %v1848_v8  ;;  %vm1184_vm6 = vweird.f32 %v1848_v8 }
 0x350   :  { %v1100_v51 = vsel %vm1089_vm5, %v1088_v46, -inf  ;;  %v1181_v11 = vsub.f32 1.0, %v1180_v9 }
 0x351   :  { %v1101_v55 = vmax.f32 %v1099_v49, %v1100_v51 }
 0x352   :  { %v1182_v14 = vmul.f32 %v1848_v8, %v1181_v11 }
 0x353   :  { %v1106_v59 = vadd.f32 %v1102_v32, %v1101_v55  ;;  %v1820_v55 = vld [vmem:[#allocation11 + $0x40] sm:$0xff] }
 0x354   :  { %v1183_v16 = vadd.f32 %v1848_v8, %v1182_v14  ;;  %1390 = vmatpush.bf16.msrb.mxu3 %v1820_v55 }
 0x355   :  { %v1112_v63 = vsel %vm1089_vm5, %v1106_v59, 0.0  ;;  %v1117_v1 = vmul.f32 %v1106_v59, %v1106_v59 }
 0x356   :  { %v1113_v2 = vadd.f32 %v1112_v63, %v1111_v61  ;;  %v1185_v17 = vsel %vm1184_vm6, %v1848_v8, %v1183_v16  ;;  %v1815_v61 = vld [vmem:[#allocation11 + $0x18] sm:$0xff]  ;;  %v1813_v63 = vld [vmem:[#allocation11 + $0x8] sm:$0xff] }
 0x357   :  { %v1123_v4 = vsel %vm1089_vm5, %v1117_v1, 0.0  ;;  %v1812_v1 = vld [vmem:[#allocation11] sm:$0xff] }
 0x358   :  { %1692 = vmatmul.msk.f32.vlgmr.msra.gmra.mxu1 %vm1089_vm5, %v1113_v2  ;;  %v1124_v29 = vadd.f32 %v1123_v4, %v1122_v3  ;;  %v1412_v2 = vld [vmem:[#allocation13 + $0x78] sm:$0xff]  ;;  %v1411_v3 = vld [vmem:[#allocation13 + $0x70] sm:$0xff] }
 0x35a   :  { %1693 = vmatmul.msk.f32.vlgmr.msra.gmra.mxu3 %vm1089_vm5, %v1124_v29  ;;  %v1410_v29 = vld [vmem:[#allocation13 + $0x68] sm:$0xff] }
 0x3d5   :  { %v1153_v6 = vpop.f32.mrf.mxu1 }
 0x3d6   :  { %v1186_v57 = vmul.f32 %v1185_v17, %v1153_v6 }
 0x3d8   :  { %v1188_v5 = vmul.f32 %v1186_v57, %v1186_v57 }
 0x3dd   :  { %v1176_v12 = vpop.f32.mrf.mxu3 }
 0x3de   :  { %v1187_v19 = vmul.f32 %v1185_v17, %v1176_v12  ;;  %v1409_v17 = vld [vmem:[#allocation13 + $0x60] sm:$0xff]  ;;  %v1407_v12 = vld [vmem:[#allocation13 + $0x50] sm:$0xff] }
 0x3e0   :  { %v1189_v21 = vsub.f32 %v1187_v19, %v1188_v5  ;;  %v1406_v5 = vld [vmem:[#allocation13 + $0x48] sm:$0xff]  ;;  %v1405_v19 = vld [vmem:[#allocation13 + $0x40] sm:$0xff] }
 0x3e2   :  { %v1190_v22 = vmax.f32 %v1189_v21, 0.0  ;;  %v1404_v21 = vld [vmem:[#allocation13 + $0x38] sm:$0xff] }
 0x3e4   :  { %v1191_v45 = vadd.f32 1e-05, %v1190_v22  ;;  %v1403_v22 = vld [vmem:[#allocation13 + $0x30] sm:$0xff] }
 0x3e6   :  { %1849 = vrsqrt.f32 %v1191_v45  ;;  %vm1198_vm8 = vweird.f32 %v1191_v45 }
 0x3ec   :  { %v1850_v18 = vpop.eup %1849 }
 0x3ed   :  { %v1193_v27 = vmul.f32 %v1850_v18, %v1191_v45  ;;  %vm1199_vm7 = vweird.f32 %v1850_v18  ;;  %v1402_v45 = vld [vmem:[#allocation13 + $0x28] sm:$0xff] }
 0x3ee   :  { %vm1200_vm9 = vmor %vm1198_vm8, %vm1199_vm7 }
 0x3ef   :  { %v1194_v15 = vmul.f32 %v1850_v18, %v1193_v27 }
 0x3f1   :  { %v1195_v10 = vmul.f32 0.5, %v1194_v15  ;;  %v1273_v15 = vperm.slane %v2220_v48, 3 }
 0x3f3   :  { %v1196_v28 = vsub.f32 1.5, %v1195_v10 }
 0x3f5   :  { %v1197_v30 = vmul.f32 %v1850_v18, %v1196_v28 }
 0x3f7   :  { %v1201_v32 = vsel %vm1200_vm9, %v1850_v18, %v1197_v30  ;;  %v1398_v18 = vld [vmem:[#allocation13 + $0x8] sm:$0xff] }
 0x3f8   :  { %v1203_v33 = vmul.f32 %v1202_v53, %v1201_v32 }
 0x3fa   :  { %v1204_v36 = vmul.f32 %v1203_v33, %v1186_v57  ;;  %v1210_v38 = vmul.f32 %v1203_v33, %v1106_v59  ;;  %v1208_v39 = vmul.f32 %v1203_v33, %v2328_v35  ;;  %v1209_v40 = vmul.f32 %v1203_v33, %v2338_v41  ;;  %v1816_v41 = vld [vmem:[#allocation11 + $0x20] sm:$0xff]  ;;  %v1408_v57 = vld [vmem:[#allocation13 + $0x58] sm:$0xff] }
 0x3fb   :  { %v1207_v43 = vmul.f32 %v1203_v33, %v2331_v42  ;;  %v1817_v42 = vld [vmem:[#allocation11 + $0x28] sm:$0xff] }
 0x3fc   :  { %v1206_v13 = vsub.f32 %v1205_v34, %v1204_v36  ;;  %1372 = vmatpush.bf16.msrb.mxu1 %v1817_v42 }
 0x3fe   :  { %v1214_v44 = vadd.f32 %v1210_v38, %v1206_v13  ;;  %v1212_v46 = vadd.f32 %v1208_v39, %v1206_v13  ;;  %v1213_v47 = vadd.f32 %v1209_v40, %v1206_v13  ;;  %v1211_v0 = vadd.f32 %v1207_v43, %v1206_v13 }
 0x400   :  { %v1218_v49 = vmax.f32 %v1214_v44, 0.0  ;;  %v1216_v51 = vmax.f32 %v1212_v46, 0.0  ;;  %1373 = vmatpush.bf16.msrb.mxu1 %v1816_v41  ;;  %v1217_v4 = vmax.f32 %v1213_v47, 0.0  ;;  %v1215_v11 = vmax.f32 %v1211_v0, 0.0 }
 0x402   :  { %v1222_v52 = vpack.c.bf16 %v1218_v49, %v1218_v49  ;;  %v1220_v54 = vpack.c.bf16 %v1216_v51, %v1216_v51  ;;  %v1221_v7 = vpack.c.bf16 %v1217_v4, %v1217_v4  ;;  %v1219_v14 = vpack.c.bf16 %v1215_v11, %v1215_v11 }
 0x404   :  { %v1229_v56 = vunpack.c.l.b16 %v1222_v52  ;;  %v1224_v58 = vunpack.c.l.b16 %v1220_v54  ;;  %1374 = vmatpush.bf16.msrb.mxu1 %v1815_v61 }
 0x406   :  { %v1230_v59 = vpack.c.b16 %v1229_v56, %v1229_v56  ;;  %v1225_v35 = vpack.c.b16 %v1224_v58, %v1224_v58 }
 0x408   :  { %1231 = vrot.lane.b32.xlu2 %v1230_v59, %s2083_s17  ;;  %1226 = vrot.lane.b32.xlu0 %v1225_v35, %s2083_s17 }
 0x409   :  { %1375 = vmatpush.bf16.msrb.mxu1 %v1814_v62 }
 0x40d   :  { %1376 = vmatpush.bf16.msrb.mxu1 %v1813_v63 }
 0x411   :  { %1377 = vmatpush.bf16.msrb.mxu1 %v1812_v1 }
 0x415   :  { %1414 = vmatpush.msra.mxu1 %v1412_v2 }
 0x417   :  { %1415 = vmatpush.msra.mxu1 %v1411_v3 }
 0x419   :  { %1416 = vmatpush.msra.mxu1 %v1410_v29 }
 0x41b   :  { %1417 = vmatpush.msra.mxu1 %v1409_v17 }
 0x41d   :  { %1418 = vmatpush.msra.mxu1 %v1408_v57 }
 0x41f   :  { %1419 = vmatpush.msra.mxu1 %v1407_v12 }
 0x421   :  { %1420 = vmatpush.msra.mxu1 %v1406_v5 }
 0x423   :  { %1421 = vmatpush.msra.mxu1 %v1405_v19 }
 0x425   :  { %1422 = vmatpush.msra.mxu1 %v1404_v21 }
 0x427   :  { %1423 = vmatpush.msra.mxu1 %v1403_v22 }
 0x429   :  { %1424 = vmatpush.msra.mxu1 %v1402_v45 }
 0x42b   :  { %1425 = vmatpush.msra.mxu1 %v1401_v23 }
 0x42d   :  { %1426 = vmatpush.msra.mxu1 %v1400_v24 }
 0x42f   :  { %1427 = vmatpush.msra.mxu1 %v1399_v25 }
 0x431   :  { %1428 = vmatpush.msra.mxu1 %v1398_v18 }
 0x433   :  { %1429 = vmatpush.msra.mxu1 %v1397_v26 }
 0x462   :  { %v1232_v8 = vpop.permute.xlu2 %1231 }
 0x463   :  { %v1239_v9 = vsel %vm1089_vm5, %v1221_v7, %v1232_v8 }
 0x464   :  { %1391 = vmatmul.bf16.vlgmr.msrb.gmra.mxu3 %v1239_v9 }
 0x47a   :  { %v1227_v16 = vpop.permute.xlu0 %1226 }
 0x47b   :  { %v1235_v6 = vsel %vm1089_vm5, %v1219_v14, %v1227_v16 }
 0x47c   :  { %1378 = vmatmul.bf16.vlgmr.msrb.gmra.mxu1 %v1235_v6 }
 0x4e7   :  { %v1392_v27 = vpop.f32.mrf.mxu3 }
 0x4ef   :  { %v1394_v60 = vpop.f32.mrf.mxu3 }
 0x4f9   :  { %v1379_v10 = vpop.f32.mrf.mxu1 }
 0x4fa   :  { %v1380_v20 = vadd.f32 %v1379_v10, %v1273_v15 }
 0x4fc   :  { %v1393_v28 = vadd.f32 %v1392_v27, %v1380_v20 }
 0x4fe   :  { %v1396_v53 = vmax.f32 %v1393_v28, 0.0 }
 0x500   :  { %1430 = vmatmul.f32.vlgmr.msra.gmra.mxu1 %v1396_v53 }
 0x501   :  { %v1381_v30 = vpop.f32.mrf.mxu1 }
 0x57d   :  { %v1431_v32 = vpop.f32.mrf.mxu1 }
 0x57e   :  { %v1432_v33 = vadd.f32 %v1431_v32, %v1413_v31 }
 0x580   :  { %1434 = vst [vmem:[#allocation16] sm:$0xff] %v1432_v33 }
 0x581   :  { %1445 = dma.vmem_to_hbm [thread:$0]  %s1441_s13, 128, %s1443_s21, [#allocation4]  }
 0x582   :  { %2077 = dma.done.wait [#allocation4], 128  }
 0x583   :  { %2078 = vsyncadd [#allocation4], 4294967168 }
 0x584   :  { %1450 = vsyncpa [#allocation3], 1 }
 0x585   :  { %1451 = vsyncpa [#allocation6], 1 }
 0x586   :  { %1452 = vsyncpa [#allocation9], 1 }
 0x587   :  { %1453 = vsyncpa [#allocation12], 1 }
 0x588   :  { %1454 = vsyncpa [#allocation15], 1 }
 0x589   :  { %1455 = vsyncpa [#allocation4], 1 }

</bundles_post_ra>
